<compile_context>
chip_gen: v6e
topology: v6e:2x2x1
jax: 0.10.0
libtpu: 0.0.40
codegen_flags: <defaults>
</compile_context>

<pallas_src>
import jax
import jax.numpy as jnp
from jax.experimental import pallas as pl
from jax.experimental.pallas import tpu as pltpu


# ---------------------------------------------------------------------------
# Pallas kernel: full stp_poolingnet forward for one block of Gb groups.
# Row layout: r = agent * Gb + group  (agent-major), so per-center slices of
# the final activations are contiguous, tile-aligned sublane ranges.
# ---------------------------------------------------------------------------
def stp_kernel(hidden_ref, ends_ref,
               w_ends2m_ref, w1h_ref, w2_ref, wc1_ref, wc2_ref,
               biases_ref, out_ref):
    n, gb, h = hidden_ref.shape            # [N agents, Gb groups, H]
    m = w1h_ref.shape[1]                   # PNMLP hidden size
    c = wc2_ref.shape[0]                   # cell-mlp hidden size
    cout = wc2_ref.shape[1]                # cell-mlp output size
    mm = w1h_ref.dtype                     # MXU operand dtype (f32 or bf16)

    b_all = biases_ref[...]                # [4, maxW] packed biases (f32)
    b1eff = b_all[0:1, :m]
    b2 = b_all[1:2, :h]
    bc1 = b_all[2:3, :c]
    bc2 = b_all[3:4, :cout]

    # Leading-dim merges only (Gb % 8 == 0 -> layout preserving, no relayout).
    hidden = hidden_ref[...].reshape(n * gb, h)          # [N*Gb, H]
    ends = ends_ref[...].reshape(n * gb, 2)              # [N*Gb, 2]

    # K=2 embedding contraction on the VPU (broadcast FMA), kept in f32.
    w02 = w_ends2m_ref[...]                              # [2, M]
    e_part = ends[:, 0:1] * w02[0:1, :] + ends[:, 1:2] * w02[1:2, :]   # [N*Gb, M]

    # Center-independent part of mlp layer-1 pre-activation.
    h_part = jnp.dot(hidden.astype(mm), w1h_ref[...],
                     preferred_element_type=jnp.float32)               # [N*Gb, M]
    row_part = h_part + e_part + b1eff                                  # [N*Gb, M]

    # All centers at once: h1[i, j, g, :] = relu(row_part[j, g] - e_part[i, g])
    row_b = row_part.reshape(1, n, gb, m)                # neighbor axis j
    e_b = e_part.reshape(n, 1, gb, m)                    # center axis i
    h1 = jnp.maximum(row_b - e_b, 0.0)                   # [N, N, Gb, M]

    h2 = jnp.dot(h1.reshape(n * n * gb, m).astype(mm), w2_ref[...],
                 preferred_element_type=jnp.float32) + b2
    h2 = jnp.maximum(h2, 0.0)                            # [N*N*Gb, H]
    # Max-pool over neighbors j: leading-axis reduction -> pure VPU.
    pooled = jnp.max(h2.reshape(n, n, gb, h), axis=1)    # [N, Gb, H]
    pooled = pooled.reshape(n * gb, h)                   # [N*Gb, H]

    # cell_mlp( concat(hidden[i], pooled[i]) ), fused K=2H weight.
    cell_in = jnp.concatenate([hidden, pooled], axis=-1).astype(mm)    # [N*Gb, 2H]
    c1 = jnp.maximum(jnp.dot(cell_in, wc1_ref[...],
                             preferred_element_type=jnp.float32) + bc1, 0.0)
    c2 = jnp.maximum(jnp.dot(c1.astype(mm), wc2_ref[...],
                             preferred_element_type=jnp.float32) + bc2, 0.0)   # [N*Gb, Cout]

    # Lane-dense output slab [Gb, N*Cout]: tile-aligned sublane slices of c2
    # (rows of center i are contiguous) lane-concatenated into 256-wide rows.
    out_ref[...] = jnp.concatenate(
        [c2[i * gb:(i + 1) * gb, :] for i in range(n)], axis=-1)


# ---------------------------------------------------------------------------
# Host-side, once-per-model weight preprocessing (no per-call work).
# ---------------------------------------------------------------------------
def prepare_params(params, matmul_dtype=jnp.float32):
    H = params["W2"].shape[0]                            # hidden_size
    w1_t = jnp.asarray(params["W1"], jnp.float32).T      # [H+E, M]
    w1h = w1_t[:H]                                       # [H, M]
    w1e = w1_t[H:]                                       # [E, M]
    w_ends2m = jnp.asarray(params["Wemb"], jnp.float32).T @ w1e        # [2, M]
    b1eff = jnp.asarray(params["b1"], jnp.float32) + params["bemb"] @ w1e
    w2 = jnp.asarray(params["W2"], jnp.float32).T        # [M, H]
    wc1 = jnp.asarray(params["Wc1"], jnp.float32).T      # [2H, C]  (fused h|pooled)
    wc2 = jnp.asarray(params["Wc2"], jnp.float32).T      # [C, Cout]

    M, C, Cout = w1h.shape[1], wc2.shape[0], wc2.shape[1]
    width = max(M, H, C, Cout)

    def pad(v):
        v = jnp.asarray(v, jnp.float32)
        return jnp.pad(v, (0, width - v.shape[0]))

    biases = jnp.stack([pad(b1eff), pad(params["b2"]),
                        pad(params["bc1"]), pad(params["bc2"])])        # [4, width]

    mm = matmul_dtype
    return (w_ends2m.astype(jnp.float32),                # VPU path: keep f32
            w1h.astype(mm), w2.astype(mm), wc1.astype(mm), wc2.astype(mm),
            biases.astype(jnp.float32))


# ---------------------------------------------------------------------------
# pallas_call wrapper: grid over group blocks, weights resident in VMEM.
# ---------------------------------------------------------------------------
def _round_up(x, m):
    return ((x + m - 1) // m) * m


def _stp_batched(hidden_g, ends_g, prepped):
    """hidden_g: [G, N, H], ends_g: [G, N, 2] -> [G, N, Cout]."""
    G, N, H = hidden_g.shape
    w_ends2m, w1h, w2, wc1, wc2, biases = prepped
    Cout = wc2.shape[1]

    # Gb multiple of 8 (layout-preserving reshapes / aligned slices).
    # Gb = 32 -> 256 MXU rows per step; with G >= 64 the grid stays >= 2 so the
    # "parallel" axis uses both v7x TensorCores.
    gb = min(32, _round_up(G, 8))
    G_pad = _round_up(G, gb)
    grid = G_pad // gb

    # Agent-major layout for the kernel (wrapper-side transpose is free plumbing).
    hidden_t = jnp.transpose(hidden_g.astype(jnp.float32), (1, 0, 2))   # [N, G, H]
    ends_t = jnp.transpose(ends_g.astype(jnp.float32), (1, 0, 2))       # [N, G, 2]
    if G_pad != G:
        pad = G_pad - G
        hidden_t = jnp.pad(hidden_t, ((0, 0), (0, pad), (0, 0)))
        ends_t = jnp.pad(ends_t, ((0, 0), (0, pad), (0, 0)))

    weights = (w_ends2m, w1h, w2, wc1, wc2, biases)

    def wspec(a):
        # Full-array block, constant block index -> weight stays VMEM-resident.
        return pl.BlockSpec(a.shape, lambda blk, _nd=a.ndim: (0,) * _nd)

    out_flat = pl.pallas_call(
        stp_kernel,
        out_shape=jax.ShapeDtypeStruct((G_pad, N * Cout), jnp.float32),
        grid=(grid,),
        in_specs=[pl.BlockSpec((N, gb, H), lambda blk: (0, blk, 0)),
                  pl.BlockSpec((N, gb, 2), lambda blk: (0, blk, 0))]
                 + [wspec(a) for a in weights],
        out_specs=pl.BlockSpec((gb, N * Cout), lambda blk: (blk, 0)),
        compiler_params=pltpu.CompilerParams(
            dimension_semantics=("parallel",)),
    )(hidden_t, ends_t, *weights)

    return out_flat[:G].reshape(G, N, Cout)


@jax.jit
def stp_poolingnet_forward(hidden_state, group_track, prepped):
    """Single-group forward, matching the PyTorch module's interface."""
    ends = group_track[:, -1, :]                         # last position per agent
    return _stp_batched(hidden_state[None], ends[None], prepped)[0]


@jax.jit
def stp_poolingnet_forward_groups(hidden_g, group_track_g, prepped):
    """Many independent groups in one pallas_call (preferred: amortizes overhead)."""
    ends_g = group_track_g[:, :, -1, :]
    return _stp_batched(hidden_g, ends_g, prepped)


# ---------------------------------------------------------------------------
# Pure-JAX reference that literally mirrors the PyTorch forward (for checking).
# ---------------------------------------------------------------------------
@jax.jit
def ref_forward(hidden, group_track, params):
    N = hidden.shape[0]
    ends = group_track[:, -1, :]
    outs = []
    for i in range(N):
        rep = ends - ends[i]
        emb = rep @ params["Wemb"].T + params["bemb"]
        mlp_in = jnp.concatenate([hidden, emb], axis=1)
        h1 = jax.nn.relu(mlp_in @ params["W1"].T + params["b1"])
        h2 = jax.nn.relu(h1 @ params["W2"].T + params["b2"])
        pooled = jnp.max(h2, axis=0)
        cell_in = jnp.concatenate([hidden[i], pooled], axis=0)
        c1 = jax.nn.relu(cell_in @ params["Wc1"].T + params["bc1"])
        c2 = jax.nn.relu(c1 @ params["Wc2"].T + params["bc2"])
        outs.append(c2)
    return jnp.stack(outs, axis=0)


def init_params(key, hidden_size, embadding_size, mlp_hidden_size,
                cell_mlp_hidden_size=32, cell_out=32):
    # Deterministic, PyTorch-Linear-style uniform(+-1/sqrt(fan_in)) init.
    def linear(k, out_f, in_f):
        k1, k2 = jax.random.split(k)
        bound = 1.0 / jnp.sqrt(in_f)
        w = jax.random.uniform(k1, (out_f, in_f), jnp.float32, -bound, bound)
        b = jax.random.uniform(k2, (out_f,), jnp.float32, -bound, bound)
        return w, b

    ks = jax.random.split(key, 5)
    Wemb, bemb = linear(ks[0], embadding_size, 2)
    W1, b1 = linear(ks[1], mlp_hidden_size, embadding_size + hidden_size)
    W2, b2 = linear(ks[2], hidden_size, mlp_hidden_size)
    # NOTE: module defines cell_mlp in_features = 2*embadding_size; it only
    # works when hidden_size == embadding_size (same assumption as PyTorch).
    Wc1, bc1 = linear(ks[3], cell_mlp_hidden_size, embadding_size * 2)
    Wc2, bc2 = linear(ks[4], cell_out, cell_mlp_hidden_size)
    return dict(Wemb=Wemb, bemb=bemb, W1=W1, b1=b1, W2=W2, b2=b2,
                Wc1=Wc1, bc1=bc1, Wc2=Wc2, bc2=bc2)


if __name__ == "__main__":
    # Shapes consistent with the module (hidden_size == embadding_size required
    # by the cell_mlp input dim).
    N = 8            # agents in the group (len(group_track))
    L = 8            # track length (only the last position is used)
    H = 32           # args.hidden_size
    E = 32           # args.embadding_size
    M = 64           # args.PNMLP_hidden_size
    G = 64           # independent groups for the batched path -> grid = 2

    key = jax.random.PRNGKey(0)
    k_h, k_t, k_p, k_gh, k_gt = jax.random.split(key, 5)
    hidden_state = jax.random.normal(k_h, (N, H), dtype=jnp.float32)
    group_track = jax.random.normal(k_t, (N, L, 2), dtype=jnp.float32)
    params = init_params(k_p, H, E, M)

    # --- f32 MXU operands: bit-tight against the reference ---
    prepped = prepare_params(params)
    out = jax.block_until_ready(
        stp_poolingnet_forward(hidden_state, group_track, prepped))
    ref = ref_forward(hidden_state, group_track, params)
    assert out.shape == (N, 32), out.shape
    assert jnp.allclose(out, ref, atol=1e-4, rtol=1e-4), (
        float(jnp.max(jnp.abs(out - ref))))

    hidden_g = jax.random.normal(k_gh, (G, N, H), dtype=jnp.float32)
    track_g = jax.random.normal(k_gt, (G, N, L, 2), dtype=jnp.float32)
    out_g = jax.block_until_ready(
        stp_poolingnet_forward_groups(hidden_g, track_g, prepped))
    assert out_g.shape == (G, N, 32), out_g.shape
    ref_g = jnp.stack([ref_forward(hidden_g[g], track_g[g], params)
                       for g in range(G)])
    assert jnp.allclose(out_g, ref_g, atol=1e-4, rtol=1e-4), (
        float(jnp.max(jnp.abs(out_g - ref_g))))

    # --- bf16 MXU operands (v6e/v7x fast path), elementwise stays f32 ---
    prepped_bf16 = prepare_params(params, matmul_dtype=jnp.bfloat16)
    out_b = jax.block_until_ready(
        stp_poolingnet_forward_groups(hidden_g, track_g, prepped_bf16))
    assert jnp.allclose(out_b, ref_g, atol=5e-2, rtol=5e-2), (
        float(jnp.max(jnp.abs(out_b - ref_g))))

    print("KERNEL_OK")
</pallas_src>

<mosaic_0001>
module attributes {stable_mosaic.version = 11 : i64} {
  func.func @stp_kernel(%arg0: i32, %arg1: memref<8x8x32xf32, #tpu.memory_space<vmem>>, %arg2: memref<8x8x2xf32, #tpu.memory_space<vmem>>, %arg3: memref<2x64xf32, #tpu.memory_space<vmem>>, %arg4: memref<32x64xf32, #tpu.memory_space<vmem>>, %arg5: memref<64x32xf32, #tpu.memory_space<vmem>>, %arg6: memref<64x32xf32, #tpu.memory_space<vmem>>, %arg7: memref<32x32xf32, #tpu.memory_space<vmem>>, %arg8: memref<4x64xf32, #tpu.memory_space<vmem>>, %arg9: memref<8x256xf32, #tpu.memory_space<vmem>>) attributes {dimension_semantics = [#tpu.dimension_semantics<parallel>], iteration_bounds = array<i64: 1>, scalar_prefetch = 0 : i64, scratch_operands = 0 : i64, tpu.core_type = #tpu.core_type<tc>, window_params = [{transform_indices = @transform_0, window_bounds = array<i64: 8, 8, 32>}, {transform_indices = @transform_1, window_bounds = array<i64: 8, 8, 2>}, {pipeline_mode = #tpu.pipeline_mode<synchronous>, transform_indices = @transform_2, window_bounds = array<i64: 2, 64>}, {pipeline_mode = #tpu.pipeline_mode<synchronous>, transform_indices = @transform_3, window_bounds = array<i64: 32, 64>}, {pipeline_mode = #tpu.pipeline_mode<synchronous>, transform_indices = @transform_4, window_bounds = array<i64: 64, 32>}, {pipeline_mode = #tpu.pipeline_mode<synchronous>, transform_indices = @transform_5, window_bounds = array<i64: 64, 32>}, {pipeline_mode = #tpu.pipeline_mode<synchronous>, transform_indices = @transform_6, window_bounds = array<i64: 32, 32>}, {pipeline_mode = #tpu.pipeline_mode<synchronous>, transform_indices = @transform_7, window_bounds = array<i64: 4, 64>}, {transform_indices = @transform_8, window_bounds = array<i64: 8, 256>}]} {
    %c0 = arith.constant 0 : index
    %c0_0 = arith.constant 0 : index
    %0 = vector.load %arg8[%c0, %c0_0] : memref<4x64xf32, #tpu.memory_space<vmem>>, vector<4x64xf32>
    %1 = vector.extract_strided_slice %0 {offsets = [0, 0], sizes = [1, 64], strides = [1, 1]} : vector<4x64xf32> to vector<1x64xf32>
    %2 = vector.extract_strided_slice %0 {offsets = [1, 0], sizes = [1, 32], strides = [1, 1]} : vector<4x64xf32> to vector<1x32xf32>
    %3 = vector.extract_strided_slice %0 {offsets = [2, 0], sizes = [1, 32], strides = [1, 1]} : vector<4x64xf32> to vector<1x32xf32>
    %4 = vector.extract_strided_slice %0 {offsets = [3, 0], sizes = [1, 32], strides = [1, 1]} : vector<4x64xf32> to vector<1x32xf32>
    %c0_1 = arith.constant 0 : index
    %c0_2 = arith.constant 0 : index
    %c0_3 = arith.constant 0 : index
    %5 = vector.load %arg1[%c0_1, %c0_2, %c0_3] : memref<8x8x32xf32, #tpu.memory_space<vmem>>, vector<8x8x32xf32>
    %6 = vector.shape_cast %5 : vector<8x8x32xf32> to vector<64x32xf32>
    %c0_4 = arith.constant 0 : index
    %c0_5 = arith.constant 0 : index
    %c0_6 = arith.constant 0 : index
    %7 = vector.load %arg2[%c0_4, %c0_5, %c0_6] : memref<8x8x2xf32, #tpu.memory_space<vmem>>, vector<8x8x2xf32>
    %8 = vector.shape_cast %7 : vector<8x8x2xf32> to vector<64x2xf32>
    %c0_7 = arith.constant 0 : index
    %c0_8 = arith.constant 0 : index
    %9 = vector.load %arg3[%c0_7, %c0_8] : memref<2x64xf32, #tpu.memory_space<vmem>>, vector<2x64xf32>
    %10 = vector.extract_strided_slice %8 {offsets = [0, 0], sizes = [64, 1], strides = [1, 1]} : vector<64x2xf32> to vector<64x1xf32>
    %11 = vector.extract_strided_slice %9 {offsets = [0, 0], sizes = [1, 64], strides = [1, 1]} : vector<2x64xf32> to vector<1x64xf32>
    %12 = vector.broadcast %10 : vector<64x1xf32> to vector<64x64xf32>
    %13 = vector.broadcast %11 : vector<1x64xf32> to vector<64x64xf32>
    %14 = arith.mulf %12, %13 : vector<64x64xf32>
    %15 = vector.extract_strided_slice %8 {offsets = [0, 1], sizes = [64, 1], strides = [1, 1]} : vector<64x2xf32> to vector<64x1xf32>
    %16 = vector.extract_strided_slice %9 {offsets = [1, 0], sizes = [1, 64], strides = [1, 1]} : vector<2x64xf32> to vector<1x64xf32>
    %17 = vector.broadcast %15 : vector<64x1xf32> to vector<64x64xf32>
    %18 = vector.broadcast %16 : vector<1x64xf32> to vector<64x64xf32>
    %19 = arith.mulf %17, %18 : vector<64x64xf32>
    %20 = arith.addf %14, %19 : vector<64x64xf32>
    %c0_9 = arith.constant 0 : index
    %c0_10 = arith.constant 0 : index
    %21 = vector.load %arg4[%c0_9, %c0_10] : memref<32x64xf32, #tpu.memory_space<vmem>>, vector<32x64xf32>
    %cst = arith.constant dense<0.000000e+00> : vector<64x64xf32>
    %22 = tpu.matmul %6, %21, %cst {dimension_numbers = #tpu.dot_dimension_numbers<[1], [0], [0], [1], [0, 0, 1, 1], [], []>} : vector<64x32xf32>, vector<32x64xf32>, vector<64x64xf32> -> vector<64x64xf32>
    %23 = arith.addf %22, %20 : vector<64x64xf32>
    %24 = vector.broadcast %1 : vector<1x64xf32> to vector<64x64xf32>
    %25 = arith.addf %23, %24 : vector<64x64xf32>
    %26 = vector.shape_cast %25 : vector<64x64xf32> to vector<1x8x8x64xf32>
    %27 = vector.shape_cast %20 : vector<64x64xf32> to vector<8x1x8x64xf32>
    %28 = vector.broadcast %26 : vector<1x8x8x64xf32> to vector<8x8x8x64xf32>
    %29 = vector.broadcast %27 : vector<8x1x8x64xf32> to vector<8x8x8x64xf32>
    %30 = arith.subf %28, %29 : vector<8x8x8x64xf32>
    %cst_11 = arith.constant 0.000000e+00 : f32
    %31 = vector.broadcast %cst_11 : f32 to vector<8x8x8x64xf32>
    %32 = arith.maximumf %30, %31 : vector<8x8x8x64xf32>
    %33 = vector.shape_cast %32 : vector<8x8x8x64xf32> to vector<512x64xf32>
    %c0_12 = arith.constant 0 : index
    %c0_13 = arith.constant 0 : index
    %34 = vector.load %arg5[%c0_12, %c0_13] : memref<64x32xf32, #tpu.memory_space<vmem>>, vector<64x32xf32>
    %cst_14 = arith.constant dense<0.000000e+00> : vector<512x32xf32>
    %35 = tpu.matmul %33, %34, %cst_14 {dimension_numbers = #tpu.dot_dimension_numbers<[1], [0], [0], [1], [0, 0, 1, 1], [], []>} : vector<512x64xf32>, vector<64x32xf32>, vector<512x32xf32> -> vector<512x32xf32>
    %36 = vector.broadcast %2 : vector<1x32xf32> to vector<512x32xf32>
    %37 = arith.addf %35, %36 : vector<512x32xf32>
    %cst_15 = arith.constant 0.000000e+00 : f32
    %38 = vector.broadcast %cst_15 : f32 to vector<512x32xf32>
    %39 = arith.maximumf %37, %38 : vector<512x32xf32>
    %40 = vector.shape_cast %39 : vector<512x32xf32> to vector<8x8x8x32xf32>
    %cst_16 = arith.constant dense<0xFF800000> : vector<8x8x32xf32>
    %41 = vector.multi_reduction <maximumf>, %40, %cst_16 [1] : vector<8x8x8x32xf32> to vector<8x8x32xf32>
    %42 = vector.shape_cast %41 : vector<8x8x32xf32> to vector<64x32xf32>
    %43 = tpu.concatenate %6, %42 in 1 : vector<64x32xf32>, vector<64x32xf32> -> vector<64x64xf32>
    %c0_17 = arith.constant 0 : index
    %c0_18 = arith.constant 0 : index
    %44 = vector.load %arg6[%c0_17, %c0_18] : memref<64x32xf32, #tpu.memory_space<vmem>>, vector<64x32xf32>
    %cst_19 = arith.constant dense<0.000000e+00> : vector<64x32xf32>
    %45 = tpu.matmul %43, %44, %cst_19 {dimension_numbers = #tpu.dot_dimension_numbers<[1], [0], [0], [1], [0, 0, 1, 1], [], []>} : vector<64x64xf32>, vector<64x32xf32>, vector<64x32xf32> -> vector<64x32xf32>
    %46 = vector.broadcast %3 : vector<1x32xf32> to vector<64x32xf32>
    %47 = arith.addf %45, %46 : vector<64x32xf32>
    %cst_20 = arith.constant 0.000000e+00 : f32
    %48 = vector.broadcast %cst_20 : f32 to vector<64x32xf32>
    %49 = arith.maximumf %47, %48 : vector<64x32xf32>
    %c0_21 = arith.constant 0 : index
    %c0_22 = arith.constant 0 : index
    %50 = vector.load %arg7[%c0_21, %c0_22] : memref<32x32xf32, #tpu.memory_space<vmem>>, vector<32x32xf32>
    %cst_23 = arith.constant dense<0.000000e+00> : vector<64x32xf32>
    %51 = tpu.matmul %49, %50, %cst_23 {dimension_numbers = #tpu.dot_dimension_numbers<[1], [0], [0], [1], [0, 0, 1, 1], [], []>} : vector<64x32xf32>, vector<32x32xf32>, vector<64x32xf32> -> vector<64x32xf32>
    %52 = vector.broadcast %4 : vector<1x32xf32> to vector<64x32xf32>
    %53 = arith.addf %51, %52 : vector<64x32xf32>
    %cst_24 = arith.constant 0.000000e+00 : f32
    %54 = vector.broadcast %cst_24 : f32 to vector<64x32xf32>
    %55 = arith.maximumf %53, %54 : vector<64x32xf32>
    %56 = vector.extract_strided_slice %55 {offsets = [0, 0], sizes = [8, 32], strides = [1, 1]} : vector<64x32xf32> to vector<8x32xf32>
    %57 = vector.extract_strided_slice %55 {offsets = [8, 0], sizes = [8, 32], strides = [1, 1]} : vector<64x32xf32> to vector<8x32xf32>
    %58 = vector.extract_strided_slice %55 {offsets = [16, 0], sizes = [8, 32], strides = [1, 1]} : vector<64x32xf32> to vector<8x32xf32>
    %59 = vector.extract_strided_slice %55 {offsets = [24, 0], sizes = [8, 32], strides = [1, 1]} : vector<64x32xf32> to vector<8x32xf32>
    %60 = vector.extract_strided_slice %55 {offsets = [32, 0], sizes = [8, 32], strides = [1, 1]} : vector<64x32xf32> to vector<8x32xf32>
    %61 = vector.extract_strided_slice %55 {offsets = [40, 0], sizes = [8, 32], strides = [1, 1]} : vector<64x32xf32> to vector<8x32xf32>
    %62 = vector.extract_strided_slice %55 {offsets = [48, 0], sizes = [8, 32], strides = [1, 1]} : vector<64x32xf32> to vector<8x32xf32>
    %63 = vector.extract_strided_slice %55 {offsets = [56, 0], sizes = [8, 32], strides = [1, 1]} : vector<64x32xf32> to vector<8x32xf32>
    %64 = tpu.concatenate %56, %57, %58, %59, %60, %61, %62, %63 in 1 : vector<8x32xf32>, vector<8x32xf32>, vector<8x32xf32>, vector<8x32xf32>, vector<8x32xf32>, vector<8x32xf32>, vector<8x32xf32>, vector<8x32xf32> -> vector<8x256xf32>
    %c0_25 = arith.constant 0 : index
    %c0_26 = arith.constant 0 : index
    %65 = vector.load %arg9[%c0_25, %c0_26] : memref<8x256xf32, #tpu.memory_space<vmem>>, vector<8x256xf32>
    tpu.vector_store %arg9[%c0_25, %c0_26], %64 {strides = array<i32>} : memref<8x256xf32, #tpu.memory_space<vmem>>, vector<8x256xf32>,
    return
  }
  func.func @transform_0(%arg0: i32) -> (i32, i32, i32) {
    %c0_i32 = arith.constant 0 : i32
    %c0_i32_0 = arith.constant 0 : i32
    %c0_i32_1 = arith.constant 0 : i32
    return %c0_i32, %arg0, %c0_i32_0 : i32, i32, i32
  }
  func.func @transform_1(%arg0: i32) -> (i32, i32, i32) {
    %c0_i32 = arith.constant 0 : i32
    %c0_i32_0 = arith.constant 0 : i32
    %c0_i32_1 = arith.constant 0 : i32
    return %c0_i32, %arg0, %c0_i32_0 : i32, i32, i32
  }
  func.func @transform_2(%arg0: i32) -> (i32, i32) {
    %c0_i32 = arith.constant 0 : i32
    %c0_i32_0 = arith.constant 0 : i32
    %c0_i32_1 = arith.constant 0 : i32
    return %c0_i32, %c0_i32_0 : i32, i32
  }
  func.func @transform_3(%arg0: i32) -> (i32, i32) {
    %c0_i32 = arith.constant 0 : i32
    %c0_i32_0 = arith.constant 0 : i32
    %c0_i32_1 = arith.constant 0 : i32
    return %c0_i32, %c0_i32_0 : i32, i32
  }
  func.func @transform_4(%arg0: i32) -> (i32, i32) {
    %c0_i32 = arith.constant 0 : i32
    %c0_i32_0 = arith.constant 0 : i32
    %c0_i32_1 = arith.constant 0 : i32
    return %c0_i32, %c0_i32_0 : i32, i32
  }
  func.func @transform_5(%arg0: i32) -> (i32, i32) {
    %c0_i32 = arith.constant 0 : i32
    %c0_i32_0 = arith.constant 0 : i32
    %c0_i32_1 = arith.constant 0 : i32
    return %c0_i32, %c0_i32_0 : i32, i32
  }
  func.func @transform_6(%arg0: i32) -> (i32, i32) {
    %c0_i32 = arith.constant 0 : i32
    %c0_i32_0 = arith.constant 0 : i32
    %c0_i32_1 = arith.constant 0 : i32
    return %c0_i32, %c0_i32_0 : i32, i32
  }
  func.func @transform_7(%arg0: i32) -> (i32, i32) {
    %c0_i32 = arith.constant 0 : i32
    %c0_i32_0 = arith.constant 0 : i32
    %c0_i32_1 = arith.constant 0 : i32
    return %c0_i32, %c0_i32_0 : i32, i32
  }
  func.func @transform_8(%arg0: i32) -> (i32, i32) {
    %c0_i32 = arith.constant 0 : i32
    %c0_i32_0 = arith.constant 0 : i32
    return %arg0, %c0_i32 : i32, i32
  }
}

</mosaic_0001>

<bundles_post_ra>
// kernel: stp_poolingnet_forward.1
= control target key start
LH: loop header
LB: loop body
LE: loop exit
PB: predicated region body
PF: predicated region fallthrough
CT: control target
= control target key end

     0   :  { %vm155_vm0 = vcmask 261120   ;;  %v1987_v2 = vmov 0   ;;  %v1988_v3 = vmov 1   ;;  %v87_v38 = vlaneseq  ;;  %s1989_s28 = smov 32   ;;  %s2658_s3 = inlined_call_operand.vmem [shape: f32[32,64], index: 3, kind: input, shape index: {}]   ;;  %s2659_s0 = inlined_call_operand.vmem [shape: f32[8,8,32], index: 0, kind: input, shape index: {}]   ;;  %s2660_s1 = inlined_call_operand.vmem [shape: f32[8,8,2], index: 1, kind: input, shape index: {}]   ;;  %s2661_s4 = inlined_call_operand.vmem [shape: f32[64,32], index: 4, kind: input, shape index: {}]   ;;  %s2662_s2 = inlined_call_operand.vmem [shape: f32[2,64], index: 2, kind: input, shape index: {}]   ;;  %s2663_s7 = inlined_call_operand.vmem [shape: f32[4,64], index: 7, kind: input, shape index: {}]   ;;  %s2664_s5 = inlined_call_operand.vmem [shape: f32[64,32], index: 5, kind: input, shape index: {}]   ;;  %s2665_s6 = inlined_call_operand.vmem [shape: f32[32,32], index: 6, kind: input, shape index: {}]   ;;  %s2666_s8 = inlined_call_operand.vmem [shape: f32[8,256], index: 8, kind: output, shape index: {}]  }
   0x1   :  { %v154_v0 = vld [vmem:[%s2658_s3 + $0x18] sm:$0xff]  ;;  %v153_v1 = vld [vmem:[%s2658_s3 + $0x10] sm:$0xff]  ;;  %1973 = vset.pattern.permute.xlu1 %v1987_v2  ;;  %1971 = vset.pattern.permute.xlu0 %v1988_v3  ;;  %v30_v4 = vld [vmem:[%s2659_s0] sm:$0xff]  ;;  %vm437_vm1 = vcmask 523264   ;;  %vm1559_vm2 = vcmask 785408  }
   0x2   :  { %1770 = vmatprep.subr.mxu0 %v154_v0  ;;  %v152_v5 = vld [vmem:[%s2658_s3 + $0x8] sm:$0xff]  ;;  %1778 = vmatprep.mubr.msk.f32.mxu0 %vm155_vm0, %v30_v4  ;;  %v151_v6 = vld [vmem:[%s2658_s3] sm:$0xff]  ;;  %v45_v7 = vld [vmem:[%s2660_s1 + $0x38] sm:$0xff]  ;;  %v2133_v41 = vshrl.u32 %v87_v38, 7 }
   0x3   :  { %1771 = vmatpush3.msra.mxu0 %v154_v0  ;;  %v44_v8 = vld [vmem:[%s2660_s1 + $0x30] sm:$0xff]  ;;  %84 = vperm.xlu1 %1973, %v45_v7   ;;  %v31_v9 = vld [vmem:[%s2659_s0 + $0x8] sm:$0xff]  ;;  %v33_v11 = vld [vmem:[%s2659_s0 + $0x18] sm:$0xff] }
   0x4   :  { %1772 = vmatprep.subr.mxu0 %v153_v1  ;;  %124 = vperm.xlu0 %1971, %v44_v8   ;;  %v32_v10 = vld [vmem:[%s2659_s0 + $0x10] sm:$0xff]  ;;  %v34_v12 = vld [vmem:[%s2659_s0 + $0x20] sm:$0xff]  ;;  %v35_v15 = vld [vmem:[%s2659_s0 + $0x28] sm:$0xff]  ;;  %v89_v42 = vsub.s32 0, %v2133_v41  ;;  %v133_v43 = vsub.s32 1, %v2133_v41 }
   0x5   :  { %1773 = vmatpush3.msra.mxu0 %v153_v1  ;;  %v38_v13 = vld [vmem:[%s2660_s1] sm:$0xff]  ;;  %v40_v14 = vld [vmem:[%s2660_s1 + $0x10] sm:$0xff]  ;;  %v39_v17 = vld [vmem:[%s2660_s1 + $0x8] sm:$0xff] }
   0x6   :  { %1774 = vmatprep.subr.mxu0 %v152_v5  ;;  %v36_v16 = vld [vmem:[%s2659_s0 + $0x30] sm:$0xff]  ;;  %v37_v18 = vld [vmem:[%s2659_s0 + $0x38] sm:$0xff]  ;;  %v42_v20 = vld [vmem:[%s2660_s1 + $0x20] sm:$0xff] }
   0x7   :  { %1775 = vmatpush3.msra.mxu0 %v152_v5  ;;  %1974 = vset.pattern.permute.xlu1 %v1988_v3  ;;  %v41_v19 = vld [vmem:[%s2660_s1 + $0x18] sm:$0xff]  ;;  %v43_v21 = vld [vmem:[%s2660_s1 + $0x28] sm:$0xff]  ;;  %v431_v23 = vld [vmem:[%s2661_s4 + $0x30] sm:$0xff] }
   0x8   :  { %1776 = vmatprep.subr.mxu0 %v151_v6  ;;  %128 = vperm.xlu1 %1974, %v45_v7   ;;  %v432_v22 = vld [vmem:[%s2661_s4 + $0x38] sm:$0xff]  ;;  %v430_v24 = vld [vmem:[%s2661_s4 + $0x28] sm:$0xff]  ;;  %v429_v25 = vld [vmem:[%s2661_s4 + $0x20] sm:$0xff] }
   0x9   :  { %1777 = vmatpush3.msra.mxu0 %v151_v6  ;;  %1972 = vset.pattern.permute.xlu0 %v1987_v2  ;;  %v428_v26 = vld [vmem:[%s2661_s4 + $0x18] sm:$0xff]  ;;  %v427_v27 = vld [vmem:[%s2661_s4 + $0x10] sm:$0xff]  ;;  %v426_v28 = vld [vmem:[%s2661_s4 + $0x8] sm:$0xff] }
   0xa   :  { %1779 = vmatmul.mubr.msk.f32.vlgmr.msra.gmra.mxu0 %vm155_vm0, %v31_v9  ;;  %79 = vperm.xlu0 %1972, %v44_v8   ;;  %v425_v29 = vld [vmem:[%s2661_s4] sm:$0xff] }
   0xb   :  { %1781 = vmatprep.mubr.msk.f32.mxu0 %vm155_vm0, %v32_v10  ;;  %1790 = vmatprep.subr.mxu0 %v432_v22  ;;  %v46_v45 = vld [vmem:[%s2662_s2] sm:$0x3] }
   0xc   :  { %1975 = vset.pattern.permute.xlu1 %v1987_v2  ;;  %1950 = vmatprep.subr.mxu1 %v432_v22  ;;  %v90_v47 = vrot.slane %v46_v45, %v89_v42  ;;  %v134_v48 = vrot.slane %v46_v45, %v133_v43  ;;  %v2145_v55 = vld [vmem:[%s2663_s7] sm:$0xf] }
   0xd   :  { %49 = vperm.xlu1 %1975, %v38_v13   ;;  %1791 = vmatpush3.msra.mxu0 %v432_v22  ;;  %v288_v61 = vrot.slane %v2145_v55, %v89_v42 }
   0xe   :  { %1782 = vmatmul.mubr.msk.f32.gmra.mxu0 %vm155_vm0, %v33_v11  ;;  %59 = vperm.xlu0 %1972, %v40_v14  }
   0xf   :  { %1784 = vmatprep.mubr.msk.f32.mxu0 %vm155_vm0, %v34_v12  ;;  %1958 = vmatpush3.msra.mxu1 %v432_v22 }
  0x10   :  { %1792 = vmatprep.subr.mxu0 %v431_v23  ;;  %1951 = vmatprep.subr.mxu1 %v431_v23 }
  0x11   :  { %1976 = vset.pattern.permute.xlu1 %v1988_v3  ;;  %1793 = vmatpush3.msra.mxu0 %v431_v23 }
  0x12   :  { %1785 = vmatmul.mubr.msk.f32.gmra.mxu0 %vm155_vm0, %v35_v15  ;;  %100 = vperm.xlu1 %1976, %v38_v13  }
  0x13   :  { %1787 = vmatprep.mubr.msk.f32.mxu0 %vm155_vm0, %v36_v16  ;;  %54 = vperm.xlu0 %1972, %v39_v17  }
  0x14   :  { %1959 = vmatpush3.msra.mxu1 %v431_v23  ;;  %1794 = vmatprep.subr.mxu0 %v430_v24 }
  0x15   :  { %1952 = vmatprep.subr.mxu1 %v430_v24  ;;  %1795 = vmatpush3.msra.mxu0 %v430_v24 }
  0x16   :  { %1788 = vmatmul.mubr.msk.f32.gmra.mxu0 %vm155_vm0, %v37_v18  ;;  %108 = vperm.xlu1 %1976, %v40_v14  }
  0x17   :  { %64 = vperm.xlu0 %1972, %v41_v19   ;;  %1960 = vmatpush3.msra.mxu1 %v430_v24 }
  0x18   :  { %1796 = vmatprep.subr.mxu0 %v429_v25  ;;  %1953 = vmatprep.subr.mxu1 %v429_v25 }
  0x19   :  { %1797 = vmatpush3.msra.mxu0 %v429_v25  ;;  %1961 = vmatpush3.msra.mxu1 %v429_v25 }
  0x1a   :  { %104 = vperm.xlu1 %1976, %v39_v17   ;;  %1798 = vmatprep.subr.mxu0 %v428_v26 }
  0x1b   :  { %69 = vperm.xlu0 %1972, %v42_v20   ;;  %1954 = vmatprep.subr.mxu1 %v428_v26 }
  0x1c   :  { %1799 = vmatpush3.msra.mxu0 %v428_v26  ;;  %1962 = vmatpush3.msra.mxu1 %v428_v26 }
  0x1d   :  { %1800 = vmatprep.subr.mxu0 %v427_v27  ;;  %1955 = vmatprep.subr.mxu1 %v427_v27 }
  0x1e   :  { %112 = vperm.xlu1 %1976, %v41_v19   ;;  %1801 = vmatpush3.msra.mxu0 %v427_v27 }
  0x1f   :  { %74 = vperm.xlu0 %1972, %v43_v21   ;;  %1963 = vmatpush3.msra.mxu1 %v427_v27 }
  0x20   :  { %1802 = vmatprep.subr.mxu0 %v426_v28  ;;  %1956 = vmatprep.subr.mxu1 %v426_v28 }
  0x21   :  { %1803 = vmatpush3.msra.mxu0 %v426_v28  ;;  %1964 = vmatpush3.msra.mxu1 %v426_v28 }
  0x22   :  { %116 = vperm.xlu1 %1976, %v42_v20   ;;  %1804 = vmatprep.subr.mxu0 %v425_v29 }
  0x23   :  { %1977 = vset.pattern.permute.xlu0 %v1988_v3  ;;  %1957 = vmatprep.subr.mxu1 %v425_v29 }
  0x24   :  { %1805 = vmatpush3.msra.mxu0 %v425_v29  ;;  %1965 = vmatpush3.msra.mxu1 %v425_v29 }
  0x26   :  { %120 = vperm.xlu1 %1976, %v43_v21  }
  0x7e   :  { %v85_v30 = vpop.permute.xlu1 %84 }
  0x7f   :  { %v125_v32 = vpop.permute.xlu0 %124  ;;  %v98_v15 = vmul.f32 %v90_v47, %v85_v30 }
  0x80   :  { %v141_v23 = vmul.f32 %v134_v48, %v125_v32 }
  0x83   :  { %v129_v31 = vpop.permute.xlu1 %128 }
  0x84   :  { %v142_v16 = vmul.f32 %v134_v48, %v129_v31 }
  0x85   :  { %v80_v34 = vpop.permute.xlu0 %79 }
  0x86   :  { %v97_v24 = vmul.f32 %v90_v47, %v80_v34 }
  0x88   :  { %v50_v33 = vpop.permute.xlu1 %49  ;;  %v2188_v38 = vadd.f32 %v141_v23, %v97_v24 }
  0x89   :  { %v60_v36 = vpop.permute.xlu0 %59  ;;  %v91_v53 = vmul.f32 %v90_v47, %v50_v33 }
  0x8a   :  { %v93_v62 = vmul.f32 %v90_v47, %v60_v36 }
  0x8d   :  { %v101_v35 = vpop.permute.xlu1 %100 }
  0x8e   :  { %v55_v39 = vpop.permute.xlu0 %54  ;;  %v135_v54 = vmul.f32 %v134_v48, %v101_v35  ;;  %v2179_v35 = vadd.f32 %v142_v16, %v98_v15 }
  0x8f   :  { %v92_v49 = vmul.f32 %v90_v47, %v55_v39 }
  0x90   :  { %v2149_v59 = vadd.f32 %v135_v54, %v91_v53 }
  0x91   :  { %v109_v37 = vpop.permute.xlu1 %108 }
  0x92   :  { %v65_v44 = vpop.permute.xlu0 %64  ;;  %v137_v63 = vmul.f32 %v134_v48, %v109_v37 }
  0x93   :  { %v94_v57 = vmul.f32 %v90_v47, %v65_v44 }
  0x94   :  { %v2158_v9 = vadd.f32 %v137_v63, %v93_v62 }
  0x95   :  { %v105_v40 = vpop.permute.xlu1 %104 }
  0x96   :  { %v136_v50 = vmul.f32 %v134_v48, %v105_v40  ;;  %v70_v51 = vpop.permute.xlu0 %69 }
  0x97   :  { %v95_v11 = vmul.f32 %v90_v47, %v70_v51 }
  0x98   :  { %v2147_v56 = vadd.f32 %v136_v50, %v92_v49 }
  0x99   :  { %v113_v46 = vpop.permute.xlu1 %112 }
  0x9a   :  { %v138_v58 = vmul.f32 %v134_v48, %v113_v46  ;;  %v75_v60 = vpop.permute.xlu0 %74 }
  0x9b   :  { %v96_v5 = vmul.f32 %v90_v47, %v75_v60 }
  0x9c   :  { %v2152_v2 = vadd.f32 %v138_v58, %v94_v57 }
  0x9d   :  { %v117_v52 = vpop.permute.xlu1 %116 }
  0x9e   :  { %v139_v12 = vmul.f32 %v134_v48, %v117_v52 }
  0xa0   :  { %v2172_v26 = vadd.f32 %v139_v12, %v95_v11 }
  0xa1   :  { %v121_v0 = vpop.permute.xlu1 %120 }
  0xa2   :  { %v140_v6 = vmul.f32 %v134_v48, %v121_v0 }
  0xa4   :  { %v2165_v19 = vadd.f32 %v140_v6, %v96_v5 }
  0xca   :  { %v1780_v1 = vpop.f32.mrf.mxu0 }
  0xcb   :  { %v252_v3 = vadd.f32 %v1780_v1, %v2147_v56 }
  0xcc   :  { %v246_v4 = vpop.f32.mrf.mxu0 }
  0xcd   :  { %v2155_v7 = vadd.f32 %v288_v61, %v252_v3  ;;  %v247_v8 = vadd.f32 %v246_v4, %v2149_v59 }
  0xce   :  { %v1783_v10 = vpop.f32.mrf.mxu0 }
  0xcf   :  { %v2160_v13 = vadd.f32 %v288_v61, %v247_v8  ;;  %v262_v14 = vadd.f32 %v1783_v10, %v2152_v2  ;;  %v298_v18 = vsub.f32 %v2155_v7, %v2149_v59  ;;  %v306_v3 = vsub.f32 %v2155_v7, %v2147_v56 }
  0xd0   :  { %v256_v17 = vpop.f32.mrf.mxu0 }
  0xd1   :  { %v2167_v20 = vadd.f32 %v288_v61, %v262_v14  ;;  %v257_v21 = vadd.f32 %v256_v17, %v2158_v9  ;;  %v297_v22 = vsub.f32 %v2160_v13, %v2149_v59  ;;  %v362_v31 = vmax.f32 %v298_v18, 0.0 }
  0xd2   :  { %v1786_v25 = vpop.f32.mrf.mxu0  ;;  %v305_v60 = vsub.f32 %v2160_v13, %v2147_v56  ;;  %v370_v10 = vmax.f32 %v306_v3, 0.0 }
  0xd3   :  { %v2174_v27 = vadd.f32 %v288_v61, %v257_v21  ;;  %v272_v28 = vadd.f32 %v1786_v25, %v2165_v19  ;;  %v361_v29 = vmax.f32 %v297_v22, 0.0  ;;  %v300_v33 = vsub.f32 %v2167_v20, %v2149_v59 }
  0xd4   :  { %v266_v30 = vpop.f32.mrf.mxu0  ;;  %v369_v4 = vmax.f32 %v305_v60, 0.0  ;;  %v308_v12 = vsub.f32 %v2167_v20, %v2147_v56  ;;  %v324_v14 = vsub.f32 %v2167_v20, %v2152_v2 }
  0xd5   :  { %v2181_v36 = vadd.f32 %v288_v61, %v272_v28  ;;  %v267_v32 = vadd.f32 %v266_v30, %v2172_v26  ;;  %1806 = vmatprep.mubr.msk.f32.mxu0 %vm437_vm1, %v361_v29  ;;  %v299_v34 = vsub.f32 %v2174_v27, %v2149_v59  ;;  %v364_v45 = vmax.f32 %v300_v33, 0.0 }
  0xd6   :  { %v1789_v37 = vpop.f32.mrf.mxu0  ;;  %1807 = vmatmul.mubr.msk.f32.vlgmr.msra.gmra.mxu0 %vm437_vm1, %v362_v31  ;;  %v307_v6 = vsub.f32 %v2174_v27, %v2147_v56  ;;  %v323_v8 = vsub.f32 %v2174_v27, %v2152_v2  ;;  %v372_v23 = vmax.f32 %v308_v12, 0.0  ;;  %v388_v24 = vmax.f32 %v324_v14, 0.0 }
  0xd7   :  { %v2190_v39 = vadd.f32 %v288_v61, %v267_v32  ;;  %v282_v40 = vadd.f32 %v1789_v37, %v2179_v35  ;;  %v363_v42 = vmax.f32 %v299_v34, 0.0  ;;  %v302_v46 = vsub.f32 %v2181_v36, %v2149_v59 }
  0xd8   :  { %v276_v44 = vpop.f32.mrf.mxu0  ;;  %v371_v15 = vmax.f32 %v307_v6, 0.0  ;;  %v387_v16 = vmax.f32 %v323_v8, 0.0  ;;  %v310_v21 = vsub.f32 %v2181_v36, %v2147_v56  ;;  %v326_v22 = vsub.f32 %v2181_v36, %v2152_v2 }
  0xd9   :  { %v2195_v47 = vadd.f32 %v288_v61, %v282_v40  ;;  %v277_v48 = vadd.f32 %v276_v44, %v2188_v38  ;;  %1809 = vmatprep.mubr.msk.f32.mxu0 %vm437_vm1, %v363_v42  ;;  %v301_v49 = vsub.f32 %v2190_v39, %v2149_v59  ;;  %v366_v52 = vmax.f32 %v302_v46, 0.0 }
  0xda   :  { %1810 = vmatmul.mubr.msk.f32.gmra.mxu0 %vm437_vm1, %v364_v45  ;;  %v309_v17 = vsub.f32 %v2190_v39, %v2147_v56  ;;  %v325_v18 = vsub.f32 %v2190_v39, %v2152_v2  ;;  %v374_v31 = vmax.f32 %v310_v21, 0.0  ;;  %v390_v33 = vmax.f32 %v326_v22, 0.0 }
  0xdb   :  { %v2202_v50 = vadd.f32 %v288_v61, %v277_v48  ;;  %v365_v51 = vmax.f32 %v301_v49, 0.0  ;;  %v304_v53 = vsub.f32 %v2195_v47, %v2149_v59  ;;  %v320_v54 = vsub.f32 %v2195_v47, %v2158_v9 }
  0xdc   :  { %v321_v61 = vsub.f32 %v2160_v13, %v2152_v2  ;;  %v373_v25 = vmax.f32 %v309_v17, 0.0  ;;  %v389_v28 = vmax.f32 %v325_v18, 0.0  ;;  %v314_v32 = vsub.f32 %v2155_v7, %v2158_v9 }
  0xdd   :  { %1812 = vmatprep.mubr.msk.f32.mxu0 %vm437_vm1, %v365_v51  ;;  %v303_v57 = vsub.f32 %v2202_v50, %v2149_v59  ;;  %v319_v58 = vsub.f32 %v2202_v50, %v2158_v9  ;;  %v368_v0 = vmax.f32 %v304_v53, 0.0  ;;  %v384_v1 = vmax.f32 %v320_v54, 0.0 }
  0xde   :  { %1813 = vmatmul.mubr.msk.f32.gmra.mxu0 %vm437_vm1, %v366_v52  ;;  %v322_v59 = vsub.f32 %v2155_v7, %v2152_v2  ;;  %v385_v5 = vmax.f32 %v321_v61, 0.0  ;;  %v311_v29 = vsub.f32 %v2202_v50, %v2147_v56  ;;  %v327_v30 = vsub.f32 %v2202_v50, %v2152_v2 }
  0xdf   :  { %v367_v62 = vmax.f32 %v303_v57, 0.0  ;;  %v383_v63 = vmax.f32 %v319_v58, 0.0  ;;  %v350_v34 = vsub.f32 %v2181_v36, %v2188_v38  ;;  %v312_v37 = vsub.f32 %v2195_v47, %v2147_v56 }
  0xe0   :  { %v386_v11 = vmax.f32 %v322_v59, 0.0  ;;  %v328_v40 = vsub.f32 %v2195_v47, %v2152_v2  ;;  %v313_v42 = vsub.f32 %v2160_v13, %v2158_v9  ;;  %v329_v44 = vsub.f32 %v2160_v13, %v2172_v26 }
  0xe1   :  { %1815 = vmatprep.mubr.msk.f32.mxu0 %vm437_vm1, %v367_v62  ;;  %1839 = vmatprep.mubr.msk.f32.mxu1 %vm437_vm1, %v383_v63  ;;  %v375_v45 = vmax.f32 %v311_v29, 0.0  ;;  %v391_v46 = vmax.f32 %v327_v30, 0.0  ;;  %v352_v48 = vsub.f32 %v2195_v47, %v2188_v38  ;;  %v353_v49 = vsub.f32 %v2160_v13, %v2179_v35 }
  0xe2   :  { %1816 = vmatmul.mubr.msk.f32.gmra.mxu0 %vm437_vm1, %v368_v0  ;;  %1840 = vmatmul.mubr.msk.f32.vlgmr.msra.gmra.mxu1 %vm437_vm1, %v384_v1  ;;  %v354_v56 = vsub.f32 %v2155_v7, %v2179_v35  ;;  %v355_v2 = vsub.f32 %v2174_v27, %v2179_v35  ;;  %v356_v51 = vsub.f32 %v2167_v20, %v2179_v35  ;;  %v376_v57 = vmax.f32 %v312_v37, 0.0 }
  0xe3   :  { %1818 = vmatprep.mubr.msk.f32.mxu0 %vm437_vm1, %v369_v4  ;;  %1842 = vmatprep.mubr.msk.f32.mxu1 %vm437_vm1, %v385_v5  ;;  %v330_v52 = vsub.f32 %v2155_v7, %v2172_v26  ;;  %v357_v53 = vsub.f32 %v2190_v39, %v2179_v35  ;;  %v358_v54 = vsub.f32 %v2181_v36, %v2179_v35  ;;  %v392_v58 = vmax.f32 %v328_v40, 0.0 }
  0xe4   :  { %v377_v60 = vmax.f32 %v313_v42, 0.0  ;;  %v359_v61 = vsub.f32 %v2202_v50, %v2179_v35  ;;  %v393_v62 = vmax.f32 %v329_v44, 0.0  ;;  %v315_v63 = vsub.f32 %v2174_v27, %v2158_v9 }
  0xe5   :  { %v331_v0 = vsub.f32 %v2174_v27, %v2172_v26  ;;  %v360_v1 = vsub.f32 %v2195_v47, %v2179_v35  ;;  %v378_v3 = vmax.f32 %v314_v32, 0.0  ;;  %v394_v59 = vmax.f32 %v330_v52, 0.0 }
  0xe6   :  { %1819 = vmatmul.mubr.msk.f32.gmra.mxu0 %vm437_vm1, %v370_v10  ;;  %1843 = vmatmul.mubr.msk.f32.gmra.mxu1 %vm437_vm1, %v386_v11  ;;  %v316_v4 = vsub.f32 %v2167_v20, %v2158_v9  ;;  %v332_v5 = vsub.f32 %v2167_v20, %v2172_v26  ;;  %v379_v6 = vmax.f32 %v315_v63, 0.0  ;;  %v317_v10 = vsub.f32 %v2190_v39, %v2158_v9 }
  0xe7   :  { %1821 = vmatprep.mubr.msk.f32.mxu0 %vm437_vm1, %v371_v15  ;;  %1845 = vmatprep.mubr.msk.f32.mxu1 %vm437_vm1, %v387_v16  ;;  %v395_v8 = vmax.f32 %v331_v0, 0.0  ;;  %v333_v11 = vsub.f32 %v2190_v39, %v2172_v26  ;;  %v318_v15 = vsub.f32 %v2181_v36, %v2158_v9  ;;  %v334_v16 = vsub.f32 %v2181_v36, %v2172_v26 }
  0xe8   :  { %v380_v12 = vmax.f32 %v316_v4, 0.0  ;;  %v396_v14 = vmax.f32 %v332_v5, 0.0  ;;  %v381_v17 = vmax.f32 %v317_v10, 0.0  ;;  %v335_v21 = vsub.f32 %v2202_v50, %v2172_v26 }
  0xe9   :  { %v397_v18 = vmax.f32 %v333_v11, 0.0  ;;  %v382_v22 = vmax.f32 %v318_v15, 0.0  ;;  %v336_v9 = vsub.f32 %v2195_v47, %v2172_v26  ;;  %v338_v29 = vsub.f32 %v2155_v7, %v2165_v19 }
  0xea   :  { %1822 = vmatmul.mubr.msk.f32.gmra.mxu0 %vm437_vm1, %v372_v23  ;;  %1846 = vmatmul.mubr.msk.f32.gmra.mxu1 %vm437_vm1, %v388_v24  ;;  %v398_v23 = vmax.f32 %v334_v16, 0.0  ;;  %v399_v24 = vmax.f32 %v335_v21, 0.0  ;;  %v341_v37 = vsub.f32 %v2190_v39, %v2165_v19  ;;  %v342_v42 = vsub.f32 %v2181_v36, %v2165_v19 }
  0xeb   :  { %1824 = vmatprep.mubr.msk.f32.mxu0 %vm437_vm1, %v373_v25  ;;  %1848 = vmatprep.mubr.msk.f32.mxu1 %vm437_vm1, %v389_v28  ;;  %v337_v25 = vsub.f32 %v2160_v13, %v2165_v19  ;;  %v400_v28 = vmax.f32 %v336_v9, 0.0  ;;  %v402_v26 = vmax.f32 %v338_v29, 0.0  ;;  %v344_v52 = vsub.f32 %v2195_v47, %v2165_v19 }
  0xec   :  { %v405_v44 = vmax.f32 %v341_v37, 0.0  ;;  %v347_v0 = vsub.f32 %v2174_v27, %v2188_v38  ;;  %v349_v4 = vsub.f32 %v2190_v39, %v2188_v38  ;;  %v414_v10 = vmax.f32 %v350_v34, 0.0 }
  0xed   :  { %v401_v30 = vmax.f32 %v337_v25, 0.0  ;;  %v418_v34 = vmax.f32 %v354_v56, 0.0  ;;  %v419_v15 = vmax.f32 %v355_v2, 0.0  ;;  %v2413_v39 = vrot.slane %v2145_v55, %v133_v43  ;;  %v1246_v25 = vld [vmem:[%s2664_s5 + $0x38] sm:$0xff] }
  0xee   :  { %1825 = vmatmul.mubr.msk.f32.gmra.mxu0 %vm437_vm1, %v374_v31  ;;  %1849 = vmatmul.mubr.msk.f32.gmra.mxu1 %vm437_vm1, %v390_v33  ;;  %v339_v31 = vsub.f32 %v2174_v27, %v2165_v19  ;;  %v340_v33 = vsub.f32 %v2167_v20, %v2165_v19  ;;  %v423_v27 = vmax.f32 %v359_v61, 0.0 }
  0xef   :  { %1827 = vmatprep.mubr.msk.f32.mxu0 %vm437_vm1, %v375_v45  ;;  %1851 = vmatprep.mubr.msk.f32.mxu1 %vm437_vm1, %v391_v46  ;;  %v343_v45 = vsub.f32 %v2202_v50, %v2165_v19  ;;  %v406_v46 = vmax.f32 %v342_v42, 0.0 }
  0xf0   :  { %v403_v32 = vmax.f32 %v339_v31, 0.0  ;;  %v404_v40 = vmax.f32 %v340_v33, 0.0  ;;  %1902 = vmatprep.subr.mxu0 %v1246_v25 }
  0xf1   :  { %1903 = vmatpush3.msra.mxu0 %v1246_v25 }
  0xf2   :  { %1828 = vmatmul.mubr.msk.f32.gmra.mxu0 %vm437_vm1, %v376_v57  ;;  %1852 = vmatmul.mubr.msk.f32.gmra.mxu1 %vm437_vm1, %v392_v58  ;;  %v407_v57 = vmax.f32 %v343_v45, 0.0  ;;  %v345_v58 = vsub.f32 %v2160_v13, %v2188_v38  ;;  %v420_v13 = vmax.f32 %v356_v51, 0.0 }
  0xf3   :  { %1830 = vmatprep.mubr.msk.f32.mxu0 %vm437_vm1, %v377_v60  ;;  %1854 = vmatprep.mubr.msk.f32.mxu1 %vm437_vm1, %v393_v62  ;;  %v408_v60 = vmax.f32 %v344_v52, 0.0  ;;  %v346_v62 = vsub.f32 %v2155_v7, %v2188_v38  ;;  %v422_v7 = vmax.f32 %v358_v54, 0.0 }
  0xf4   :  { %v409_v63 = vmax.f32 %v345_v58, 0.0 }
  0xf5   :  { %v410_v19 = vmax.f32 %v346_v62, 0.0 }
  0xf6   :  { %1831 = vmatmul.mubr.msk.f32.gmra.mxu0 %vm437_vm1, %v378_v3  ;;  %1855 = vmatmul.mubr.msk.f32.gmra.mxu1 %vm437_vm1, %v394_v59  ;;  %v348_v3 = vsub.f32 %v2167_v20, %v2188_v38  ;;  %v411_v59 = vmax.f32 %v347_v0, 0.0  ;;  %v424_v20 = vmax.f32 %v360_v1, 0.0 }
  0xf7   :  { %1833 = vmatprep.mubr.msk.f32.mxu0 %vm437_vm1, %v379_v6  ;;  %1857 = vmatprep.mubr.msk.f32.mxu1 %vm437_vm1, %v395_v8  ;;  %v413_v6 = vmax.f32 %v349_v4, 0.0  ;;  %v351_v8 = vsub.f32 %v2202_v50, %v2188_v38  ;;  %v421_v38 = vmax.f32 %v357_v53, 0.0  ;;  %v1242_v4 = vld [vmem:[%s2664_s5 + $0x18] sm:$0xff] }
  0xf8   :  { %v412_v5 = vmax.f32 %v348_v3, 0.0 }
  0xf9   :  { %v415_v11 = vmax.f32 %v351_v8, 0.0 }
  0xfa   :  { %1834 = vmatmul.mubr.msk.f32.gmra.mxu0 %vm437_vm1, %v380_v12  ;;  %1858 = vmatmul.mubr.msk.f32.gmra.mxu1 %vm437_vm1, %v396_v14  ;;  %v416_v12 = vmax.f32 %v352_v48, 0.0  ;;  %v417_v14 = vmax.f32 %v353_v49, 0.0 }
  0xfb   :  { %1836 = vmatprep.mubr.msk.f32.mxu0 %vm437_vm1, %v381_v17  ;;  %1860 = vmatprep.mubr.msk.f32.mxu1 %vm437_vm1, %v397_v18 }
  0xfe   :  { %1837 = vmatmul.mubr.msk.f32.gmra.mxu0 %vm437_vm1, %v382_v22  ;;  %1861 = vmatmul.mubr.msk.f32.gmra.mxu1 %vm437_vm1, %v398_v23 }
  0xff   :  { %1863 = vmatprep.mubr.msk.f32.mxu1 %vm437_vm1, %v399_v24 }
 0x102   :  { %1864 = vmatmul.mubr.msk.f32.gmra.mxu1 %vm437_vm1, %v400_v28  ;;  %v1245_v28 = vld [vmem:[%s2664_s5 + $0x30] sm:$0xff] }
 0x103   :  { %1866 = vmatprep.mubr.msk.f32.mxu1 %vm437_vm1, %v401_v30  ;;  %1904 = vmatprep.subr.mxu0 %v1245_v28 }
 0x104   :  { %1905 = vmatpush3.msra.mxu0 %v1245_v28 }
 0x106   :  { %1867 = vmatmul.mubr.msk.f32.gmra.mxu1 %vm437_vm1, %v402_v26 }
 0x107   :  { %1869 = vmatprep.mubr.msk.f32.mxu1 %vm437_vm1, %v403_v32 }
 0x10a   :  { %1870 = vmatmul.mubr.msk.f32.gmra.mxu1 %vm437_vm1, %v404_v40  ;;  %v1244_v40 = vld [vmem:[%s2664_s5 + $0x28] sm:$0xff] }
 0x10b   :  { %1872 = vmatprep.mubr.msk.f32.mxu1 %vm437_vm1, %v405_v44  ;;  %1906 = vmatprep.subr.mxu0 %v1244_v40 }
 0x10c   :  { %1907 = vmatpush3.msra.mxu0 %v1244_v40 }
 0x10e   :  { %1873 = vmatmul.mubr.msk.f32.gmra.mxu1 %vm437_vm1, %v406_v46 }
 0x10f   :  { %1875 = vmatprep.mubr.msk.f32.mxu1 %vm437_vm1, %v407_v57  ;;  %v1243_v57 = vld [vmem:[%s2664_s5 + $0x20] sm:$0xff] }
 0x110   :  { %1908 = vmatprep.subr.mxu0 %v1243_v57 }
 0x111   :  { %1909 = vmatpush3.msra.mxu0 %v1243_v57 }
 0x112   :  { %1876 = vmatmul.mubr.msk.f32.gmra.mxu1 %vm437_vm1, %v408_v60  ;;  %1910 = vmatprep.subr.mxu0 %v1242_v4 }
 0x113   :  { %1878 = vmatprep.mubr.msk.f32.mxu1 %vm437_vm1, %v409_v63  ;;  %1911 = vmatpush3.msra.mxu0 %v1242_v4 }
 0x116   :  { %1879 = vmatmul.mubr.msk.f32.gmra.mxu1 %vm437_vm1, %v410_v19 }
 0x117   :  { %1881 = vmatprep.mubr.msk.f32.mxu1 %vm437_vm1, %v411_v59 }
 0x11a   :  { %1882 = vmatmul.mubr.msk.f32.gmra.mxu1 %vm437_vm1, %v412_v5 }
 0x11b   :  { %1884 = vmatprep.mubr.msk.f32.mxu1 %vm437_vm1, %v413_v6 }
 0x11e   :  { %1885 = vmatmul.mubr.msk.f32.gmra.mxu1 %vm437_vm1, %v414_v10 }
 0x11f   :  { %1887 = vmatprep.mubr.msk.f32.mxu1 %vm437_vm1, %v415_v11 }
 0x122   :  { %1888 = vmatmul.mubr.msk.f32.gmra.mxu1 %vm437_vm1, %v416_v12 }
 0x123   :  { %1890 = vmatprep.mubr.msk.f32.mxu1 %vm437_vm1, %v417_v14 }
 0x126   :  { %1891 = vmatmul.mubr.msk.f32.gmra.mxu1 %vm437_vm1, %v418_v34  ;;  %v1241_v34 = vld [vmem:[%s2664_s5 + $0x10] sm:$0xff] }
 0x127   :  { %1893 = vmatprep.mubr.msk.f32.mxu1 %vm437_vm1, %v419_v15  ;;  %1912 = vmatprep.subr.mxu0 %v1241_v34 }
 0x128   :  { %1913 = vmatpush3.msra.mxu0 %v1241_v34 }
 0x12a   :  { %1894 = vmatmul.mubr.msk.f32.gmra.mxu1 %vm437_vm1, %v420_v13 }
 0x12b   :  { %1896 = vmatprep.mubr.msk.f32.mxu1 %vm437_vm1, %v421_v38 }
 0x12e   :  { %1897 = vmatmul.mubr.msk.f32.gmra.mxu1 %vm437_vm1, %v422_v7 }
 0x12f   :  { %1899 = vmatprep.mubr.msk.f32.mxu1 %vm437_vm1, %v423_v27 }
 0x132   :  { %1900 = vmatmul.mubr.msk.f32.gmra.mxu1 %vm437_vm1, %v424_v20 }
 0x196   :  { %v1808_v36 = vpop.f32.mrf.mxu0 }
 0x197   :  { %v702_v48 = vadd.f32 %v1808_v36, %v2413_v39 }
 0x198   :  { %v696_v50 = vpop.f32.mrf.mxu0 }
 0x199   :  { %v697_v49 = vadd.f32 %v696_v50, %v2413_v39  ;;  %v1016_v2 = vmax.f32 %v702_v48, 0.0 }
 0x19a   :  { %v1811_v56 = vpop.f32.mrf.mxu0 }
 0x19b   :  { %v1015_v51 = vmax.f32 %v697_v49, 0.0  ;;  %v712_v53 = vadd.f32 %v1811_v56, %v2413_v39  ;;  %v1080_v43 = vsel %vm155_vm0, %v1016_v2, -inf  ;;  %v1240_v49 = vld [vmem:[%s2664_s5 + $0x8] sm:$0xff] }
 0x19c   :  { %v706_v35 = vpop.f32.mrf.mxu0  ;;  %1914 = vmatprep.subr.mxu0 %v1240_v49 }
 0x19d   :  { %v1079_v47 = vsel %vm155_vm0, %v1015_v51, -inf  ;;  %v707_v54 = vadd.f32 %v706_v35, %v2413_v39  ;;  %v1018_v55 = vmax.f32 %v712_v53, 0.0  ;;  %1915 = vmatpush3.msra.mxu0 %v1240_v49 }
 0x19e   :  { %v1814_v61 = vpop.f32.mrf.mxu0  ;;  %v1081_v17 = vmax.f32 %v1079_v47, %v1080_v43  ;;  %v1239_v43 = vld [vmem:[%s2664_s5] sm:$0xff] }
 0x19f   :  { %v1017_v1 = vmax.f32 %v707_v54, 0.0  ;;  %v722_v16 = vadd.f32 %v1814_v61, %v2413_v39  ;;  %v1084_v29 = vsel %vm155_vm0, %v1018_v55, -inf  ;;  %1916 = vmatprep.subr.mxu0 %v1239_v43 }
 0x1a0   :  { %v716_v18 = vpop.f32.mrf.mxu0  ;;  %1917 = vmatpush3.msra.mxu0 %v1239_v43 }
 0x1a1   :  { %v1082_v21 = vsel %vm155_vm0, %v1017_v1, -inf  ;;  %v717_v22 = vadd.f32 %v716_v18, %v2413_v39  ;;  %v1020_v30 = vmax.f32 %v722_v16, 0.0 }
 0x1a2   :  { %v1083_v23 = vmax.f32 %v1081_v17, %v1082_v21  ;;  %v1817_v9 = vpop.f32.mrf.mxu0  ;;  %v2424_v24 = vpop.f32.mrf.mxu1 }
 0x1a3   :  { %v1019_v31 = vmax.f32 %v717_v22, 0.0  ;;  %v732_v26 = vadd.f32 %v1817_v9, %v2413_v39  ;;  %v1088_v58 = vsel %vm155_vm0, %v1020_v30, -inf }
 0x1a4   :  { %v1085_v33 = vmax.f32 %v1083_v23, %v1084_v29  ;;  %v726_v32 = vpop.f32.mrf.mxu0  ;;  %v2434_v37 = vpop.f32.mrf.mxu1 }
 0x1a5   :  { %v1086_v42 = vsel %vm155_vm0, %v1019_v31, -inf  ;;  %v727_v44 = vadd.f32 %v726_v32, %v2413_v39  ;;  %v1022_v60 = vmax.f32 %v732_v26, 0.0 }
 0x1a6   :  { %v1087_v45 = vmax.f32 %v1085_v33, %v1086_v42  ;;  %v1820_v46 = vpop.f32.mrf.mxu0  ;;  %v1844_v52 = vpop.f32.mrf.mxu1 }
 0x1a7   :  { %v1021_v62 = vmax.f32 %v727_v44, 0.0  ;;  %v742_v63 = vadd.f32 %v1820_v46, %v2413_v39  ;;  %v822_v19 = vadd.f32 %v1844_v52, %v2413_v39  ;;  %v1092_v15 = vsel %vm155_vm0, %v1022_v60, -inf }
 0x1a8   :  { %v1089_v0 = vmax.f32 %v1087_v45, %v1088_v58  ;;  %v736_v3 = vpop.f32.mrf.mxu0  ;;  %v816_v59 = vpop.f32.mrf.mxu1 }
 0x1a9   :  { %v1090_v5 = vsel %vm155_vm0, %v1021_v62, -inf  ;;  %v737_v6 = vadd.f32 %v736_v3, %v2413_v39  ;;  %v817_v8 = vadd.f32 %v816_v59, %v2413_v39  ;;  %v1024_v11 = vmax.f32 %v742_v63, 0.0 }
 0x1aa   :  { %v1091_v10 = vmax.f32 %v1089_v0, %v1090_v5  ;;  %v1823_v12 = vpop.f32.mrf.mxu0  ;;  %v1847_v14 = vpop.f32.mrf.mxu1  ;;  %v1040_v27 = vmax.f32 %v822_v19, 0.0 }
 0x1ab   :  { %v1023_v13 = vmax.f32 %v737_v6, 0.0  ;;  %v1039_v38 = vmax.f32 %v817_v8, 0.0  ;;  %v752_v7 = vadd.f32 %v1823_v12, %v2413_v39  ;;  %v832_v20 = vadd.f32 %v1847_v14, %v2413_v39 }
 0x1ac   :  { %v746_v36 = vpop.f32.mrf.mxu0  ;;  %v826_v48 = vpop.f32.mrf.mxu1  ;;  %v1093_v50 = vmax.f32 %v1091_v10, %v1092_v15  ;;  %v1095_v53 = vsel %vm155_vm0, %v1024_v11, -inf  ;;  %v1125_v18 = vsel %vm155_vm0, %v1040_v27, -inf }
 0x1ad   :  { %v1094_v56 = vsel %vm155_vm0, %v1023_v13, -inf  ;;  %v1026_v2 = vmax.f32 %v752_v7, 0.0  ;;  %v747_v51 = vadd.f32 %v746_v36, %v2413_v39  ;;  %v1124_v35 = vsel %vm155_vm0, %v1039_v38, -inf }
 0x1ae   :  { %v827_v47 = vadd.f32 %v826_v48, %v2413_v39  ;;  %v1826_v54 = vpop.f32.mrf.mxu0  ;;  %v1850_v61 = vpop.f32.mrf.mxu1  ;;  %1207 = vrot.lane.b32.xlu0 %v1093_v50, %s1989_s28  ;;  %v1042_v55 = vmax.f32 %v832_v20, 0.0  ;;  %v1096_v21 = vmax.f32 %v1094_v56, %v1095_v53  ;;  %v1126_v25 = vmax.f32 %v1124_v35, %v1125_v18 }
 0x1af   :  { %v1025_v1 = vmax.f32 %v747_v51, 0.0  ;;  %v762_v16 = vadd.f32 %v1826_v54, %v2413_v39  ;;  %v842_v17 = vadd.f32 %v1850_v61, %v2413_v39  ;;  %v1099_v28 = vsel %vm155_vm0, %v1026_v2, -inf }
 0x1b0   :  { %v1041_v22 = vmax.f32 %v827_v47, 0.0  ;;  %v756_v23 = vpop.f32.mrf.mxu0  ;;  %v836_v9 = vpop.f32.mrf.mxu1  ;;  %v1129_v44 = vsel %vm155_vm0, %v1042_v55, -inf }
 0x1b1   :  { %v1097_v29 = vsel %vm155_vm0, %v1025_v1, -inf  ;;  %v757_v30 = vadd.f32 %v756_v23, %v2413_v39  ;;  %v1028_v33 = vmax.f32 %v762_v16, 0.0  ;;  %v837_v32 = vadd.f32 %v836_v9, %v2413_v39 }
 0x1b2   :  { %v1098_v31 = vmax.f32 %v1096_v21, %v1097_v29  ;;  %v1127_v26 = vsel %vm155_vm0, %v1041_v22, -inf  ;;  %v1829_v40 = vpop.f32.mrf.mxu0  ;;  %v1853_v42 = vpop.f32.mrf.mxu1  ;;  %v1044_v46 = vmax.f32 %v842_v17, 0.0 }
 0x1b3   :  { %v1128_v45 = vmax.f32 %v1126_v25, %v1127_v26  ;;  %v1027_v52 = vmax.f32 %v757_v30, 0.0  ;;  %v1043_v58 = vmax.f32 %v837_v32, 0.0  ;;  %v772_v60 = vadd.f32 %v1829_v40, %v2413_v39 }
 0x1b4   :  { %v1100_v57 = vmax.f32 %v1098_v31, %v1099_v28  ;;  %v852_v62 = vadd.f32 %v1853_v42, %v2413_v39  ;;  %v766_v63 = vpop.f32.mrf.mxu0  ;;  %v846_v0 = vpop.f32.mrf.mxu1  ;;  %v1103_v5 = vsel %vm155_vm0, %v1028_v33, -inf  ;;  %v1133_v38 = vsel %vm155_vm0, %v1044_v46, -inf }
 0x1b5   :  { %v1101_v19 = vsel %vm155_vm0, %v1027_v52, -inf  ;;  %v1130_v3 = vmax.f32 %v1128_v45, %v1129_v44  ;;  %v767_v59 = vadd.f32 %v766_v63, %v2413_v39  ;;  %v847_v4 = vadd.f32 %v846_v0, %v2413_v39 }
 0x1b6   :  { %v1102_v6 = vmax.f32 %v1100_v57, %v1101_v19  ;;  %v1131_v8 = vsel %vm155_vm0, %v1043_v58, -inf  ;;  %v1030_v10 = vmax.f32 %v772_v60, 0.0  ;;  %v1832_v11 = vpop.f32.mrf.mxu0  ;;  %v1856_v12 = vpop.f32.mrf.mxu1  ;;  %v1046_v7 = vmax.f32 %v852_v62, 0.0 }
 0x1b7   :  { %v1132_v14 = vmax.f32 %v1130_v3, %v1131_v8  ;;  %v1029_v34 = vmax.f32 %v767_v59, 0.0  ;;  %v1045_v15 = vmax.f32 %v847_v4, 0.0  ;;  %v782_v13 = vadd.f32 %v1832_v11, %v2413_v39 }
 0x1b8   :  { %v1104_v27 = vmax.f32 %v1102_v6, %v1103_v5  ;;  %v862_v20 = vadd.f32 %v1856_v12, %v2413_v39  ;;  %v776_v36 = vpop.f32.mrf.mxu0  ;;  %v856_v48 = vpop.f32.mrf.mxu1  ;;  %v1107_v50 = vsel %vm155_vm0, %v1030_v10, -inf  ;;  %v1137_v28 = vsel %vm155_vm0, %v1046_v7, -inf }
 0x1b9   :  { %v1105_v49 = vsel %vm155_vm0, %v1029_v34, -inf  ;;  %v1134_v56 = vmax.f32 %v1132_v14, %v1133_v38  ;;  %v1135_v2 = vsel %vm155_vm0, %v1045_v15, -inf  ;;  %v1032_v53 = vmax.f32 %v782_v13, 0.0 }
 0x1ba   :  { %v1106_v51 = vmax.f32 %v1104_v27, %v1105_v49  ;;  %v777_v35 = vadd.f32 %v776_v36, %v2413_v39  ;;  %v857_v47 = vadd.f32 %v856_v48, %v2413_v39  ;;  %v1835_v54 = vpop.f32.mrf.mxu0  ;;  %v1859_v61 = vpop.f32.mrf.mxu1  ;;  %v1048_v55 = vmax.f32 %v862_v20, 0.0 }
 0x1bb   :  { %v1136_v43 = vmax.f32 %v1134_v56, %v1135_v2  ;;  %v792_v1 = vadd.f32 %v1835_v54, %v2413_v39  ;;  %v872_v16 = vadd.f32 %v1859_v61, %v2413_v39  ;;  %v1110_v29 = vsel %vm155_vm0, %v1032_v53, -inf }
 0x1bc   :  { %v1031_v17 = vmax.f32 %v777_v35, 0.0  ;;  %v1047_v18 = vmax.f32 %v857_v47, 0.0  ;;  %v786_v21 = vpop.f32.mrf.mxu0  ;;  %v866_v22 = vpop.f32.mrf.mxu1  ;;  %v1108_v23 = vmax.f32 %v1106_v51, %v1107_v50  ;;  %v1140_v32 = vsel %vm155_vm0, %v1048_v55, -inf }
 0x1bd   :  { %v787_v9 = vadd.f32 %v786_v21, %v2413_v39  ;;  %v867_v25 = vadd.f32 %v866_v22, %v2413_v39  ;;  %v1034_v40 = vmax.f32 %v792_v1, 0.0  ;;  %v1050_v42 = vmax.f32 %v872_v16, 0.0 }
 0x1be   :  { %v1109_v30 = vsel %vm155_vm0, %v1031_v17, -inf  ;;  %v1139_v31 = vsel %vm155_vm0, %v1047_v18, -inf  ;;  %v1838_v26 = vpop.f32.mrf.mxu0  ;;  %v1862_v33 = vpop.f32.mrf.mxu1  ;;  %1209 = vrot.lane.b32.xlu1 %v1108_v23, %s1989_s28  ;;  %v1138_v44 = vmax.f32 %v1136_v43, %v1137_v28  ;;  %v812_v3 = vadd.f32 %v2424_v24, %v2413_v39 }
 0x1bf   :  { %v1033_v45 = vmax.f32 %v787_v9, 0.0  ;;  %v1049_v46 = vmax.f32 %v867_v25, 0.0  ;;  %v802_v52 = vadd.f32 %v1838_v26, %v2413_v39  ;;  %v882_v57 = vadd.f32 %v1862_v33, %v2413_v39 }
 0x1c0   :  { %v796_v58 = vpop.f32.mrf.mxu0  ;;  %v876_v60 = vpop.f32.mrf.mxu1  ;;  %v1111_v62 = vmax.f32 %v1109_v30, %v1110_v29  ;;  %v1141_v63 = vmax.f32 %v1139_v31, %v1140_v32  ;;  %v807_v59 = vadd.f32 %v2434_v37, %v2413_v39  ;;  %v1114_v14 = vsel %vm155_vm0, %v1034_v40, -inf }
 0x1c1   :  { %v797_v0 = vadd.f32 %v796_v58, %v2413_v39  ;;  %v877_v19 = vadd.f32 %v876_v60, %v2413_v39  ;;  %v1112_v4 = vsel %vm155_vm0, %v1033_v45, -inf  ;;  %v1142_v5 = vsel %vm155_vm0, %v1049_v46, -inf }
 0x1c2   :  { %v1865_v6 = vpop.f32.mrf.mxu1  ;;  %1213 = vrot.lane.b32.xlu1 %v1138_v44, %s1989_s28  ;;  %v1113_v8 = vmax.f32 %v1111_v62, %v1112_v4  ;;  %v1143_v10 = vmax.f32 %v1141_v63, %v1142_v5  ;;  %v1144_v34 = vsel %vm155_vm0, %v1050_v42, -inf  ;;  %v1036_v15 = vmax.f32 %v802_v52, 0.0 }
 0x1c3   :  { %v1035_v11 = vmax.f32 %v797_v0, 0.0  ;;  %v1051_v12 = vmax.f32 %v877_v19, 0.0  ;;  %v1052_v24 = vmax.f32 %v882_v57, 0.0  ;;  %v1037_v20 = vmax.f32 %v807_v59, 0.0 }
 0x1c4   :  { %v886_v13 = vpop.f32.mrf.mxu1  ;;  %v1115_v38 = vmax.f32 %v1113_v8, %v1114_v14  ;;  %v1145_v7 = vmax.f32 %v1143_v10, %v1144_v34  ;;  %v1038_v2 = vmax.f32 %v812_v3, 0.0  ;;  %v1118_v51 = vsel %vm155_vm0, %v1036_v15, -inf }
 0x1c5   :  { %v1116_v37 = vsel %vm155_vm0, %v1035_v11, -inf  ;;  %v1146_v27 = vsel %vm155_vm0, %v1051_v12, -inf  ;;  %v887_v36 = vadd.f32 %v886_v13, %v2413_v39  ;;  %v1148_v47 = vsel %vm155_vm0, %v1052_v24, -inf }
 0x1c6   :  { %v1868_v48 = vpop.f32.mrf.mxu1  ;;  %v1117_v50 = vmax.f32 %v1115_v38, %v1116_v37  ;;  %v1147_v49 = vmax.f32 %v1145_v7, %v1146_v27  ;;  %v892_v61 = vadd.f32 %v1865_v6, %v2413_v39  ;;  %v1120_v55 = vsel %vm155_vm0, %v1037_v20, -inf }
 0x1c7   :  { %v902_v56 = vadd.f32 %v1868_v48, %v2413_v39  ;;  %v1053_v53 = vmax.f32 %v887_v36, 0.0  ;;  %v1122_v25 = vsel %vm155_vm0, %v1038_v2, -inf }
 0x1c8   :  { %v896_v35 = vpop.f32.mrf.mxu1  ;;  %v1119_v54 = vmax.f32 %v1117_v50, %v1118_v51  ;;  %v1149_v1 = vmax.f32 %v1147_v49, %v1148_v47  ;;  %v1054_v28 = vmax.f32 %v892_v61, 0.0 }
 0x1c9   :  { %v897_v43 = vadd.f32 %v896_v35, %v2413_v39  ;;  %v1150_v17 = vsel %vm155_vm0, %v1053_v53, -inf  ;;  %v1056_v18 = vmax.f32 %v902_v56, 0.0 }
 0x1ca   :  { %v1871_v16 = vpop.f32.mrf.mxu1  ;;  %v1121_v9 = vmax.f32 %v1119_v54, %v1120_v55  ;;  %v1151_v31 = vmax.f32 %v1149_v1, %v1150_v17  ;;  %v1152_v52 = vsel %vm155_vm0, %v1054_v28, -inf }
 0x1cb   :  { %v1055_v21 = vmax.f32 %v897_v43, 0.0  ;;  %v912_v22 = vadd.f32 %v1871_v16, %v2413_v39  ;;  %v1155_v32 = vsel %vm155_vm0, %v1056_v18, -inf }
 0x1cc   :  { %v906_v23 = vpop.f32.mrf.mxu1  ;;  %v1123_v33 = vmax.f32 %v1121_v9, %v1122_v25  ;;  %v1153_v63 = vmax.f32 %v1151_v31, %v1152_v52 }
 0x1cd   :  { %v1154_v29 = vsel %vm155_vm0, %v1055_v21, -inf  ;;  %v907_v30 = vadd.f32 %v906_v23, %v2413_v39  ;;  %v1058_v40 = vmax.f32 %v912_v22, 0.0 }
 0x1ce   :  { %v1874_v26 = vpop.f32.mrf.mxu1  ;;  %v1156_v45 = vmax.f32 %v1154_v29, %v1155_v32  ;;  %1211 = vrot.lane.b32.xlu0 %v1123_v33, %s1989_s28 }
 0x1cf   :  { %v1057_v42 = vmax.f32 %v907_v30, 0.0  ;;  %v922_v44 = vadd.f32 %v1874_v26, %v2413_v39  ;;  %v1159_v0 = vsel %vm155_vm0, %v1058_v40, -inf }
 0x1d0   :  { %v916_v46 = vpop.f32.mrf.mxu1 }
 0x1d1   :  { %v1157_v57 = vsel %vm155_vm0, %v1057_v42, -inf  ;;  %v917_v58 = vadd.f32 %v916_v46, %v2413_v39  ;;  %v1060_v19 = vmax.f32 %v922_v44, 0.0 }
 0x1d2   :  { %v1158_v60 = vmax.f32 %v1156_v45, %v1157_v57  ;;  %v1877_v62 = vpop.f32.mrf.mxu1  ;;  %1215 = vrot.lane.b32.xlu0 %v1153_v63, %s1989_s28 }
 0x1d3   :  { %v1059_v3 = vmax.f32 %v917_v58, 0.0  ;;  %v932_v59 = vadd.f32 %v1877_v62, %v2413_v39  ;;  %v1163_v12 = vsel %vm155_vm0, %v1060_v19, -inf }
 0x1d4   :  { %v1160_v4 = vmax.f32 %v1158_v60, %v1159_v0  ;;  %v926_v5 = vpop.f32.mrf.mxu1 }
 0x1d5   :  { %v1161_v6 = vsel %vm155_vm0, %v1059_v3, -inf  ;;  %v927_v8 = vadd.f32 %v926_v5, %v2413_v39  ;;  %v1062_v14 = vmax.f32 %v932_v59, 0.0 }
 0x1d6   :  { %v1162_v10 = vmax.f32 %v1160_v4, %v1161_v6  ;;  %v1880_v11 = vpop.f32.mrf.mxu1 }
 0x1d7   :  { %v1061_v34 = vmax.f32 %v927_v8, 0.0  ;;  %v942_v15 = vadd.f32 %v1880_v11, %v2413_v39  ;;  %v1167_v20 = vsel %vm155_vm0, %v1062_v14, -inf }
 0x1d8   :  { %v1164_v24 = vmax.f32 %v1162_v10, %v1163_v12  ;;  %v936_v13 = vpop.f32.mrf.mxu1 }
 0x1d9   :  { %v1165_v38 = vsel %vm155_vm0, %v1061_v34, -inf  ;;  %v937_v37 = vadd.f32 %v936_v13, %v2413_v39  ;;  %v1064_v36 = vmax.f32 %v942_v15, 0.0 }
 0x1da   :  { %v1166_v7 = vmax.f32 %v1164_v24, %v1165_v38  ;;  %v1883_v27 = vpop.f32.mrf.mxu1 }
 0x1db   :  { %v1063_v48 = vmax.f32 %v937_v37, 0.0  ;;  %v952_v50 = vadd.f32 %v1883_v27, %v2413_v39  ;;  %v1170_v35 = vsel %vm155_vm0, %v1064_v36, -inf }
 0x1dc   :  { %v946_v49 = vpop.f32.mrf.mxu1  ;;  %v1168_v56 = vmax.f32 %v1166_v7, %v1167_v20 }
 0x1dd   :  { %v1169_v2 = vsel %vm155_vm0, %v1063_v48, -inf  ;;  %v947_v51 = vadd.f32 %v946_v49, %v2413_v39  ;;  %v1066_v47 = vmax.f32 %v952_v50, 0.0 }
 0x1de   :  { %v1886_v53 = vpop.f32.mrf.mxu1  ;;  %1217 = vrot.lane.b32.xlu1 %v1168_v56, %s1989_s28  ;;  %v1171_v43 = vmax.f32 %v1169_v2, %v1170_v35 }
 0x1df   :  { %v1065_v54 = vmax.f32 %v947_v51, 0.0  ;;  %v962_v61 = vadd.f32 %v1886_v53, %v2413_v39  ;;  %v1174_v21 = vsel %vm155_vm0, %v1066_v47, -inf }
 0x1e0   :  { %v956_v55 = vpop.f32.mrf.mxu1 }
 0x1e1   :  { %v1172_v1 = vsel %vm155_vm0, %v1065_v54, -inf  ;;  %v957_v16 = vadd.f32 %v956_v55, %v2413_v39  ;;  %v1068_v22 = vmax.f32 %v962_v61, 0.0  ;;  %v1978_v55 = vld [vmem:[%s2659_s0] sm:$0xff] }
 0x1e2   :  { %v1173_v17 = vmax.f32 %v1171_v43, %v1172_v1  ;;  %v1889_v18 = vpop.f32.mrf.mxu1 }
 0x1e3   :  { %v1067_v23 = vmax.f32 %v957_v16, 0.0  ;;  %v972_v9 = vadd.f32 %v1889_v18, %v2413_v39  ;;  %v1178_v33 = vsel %vm155_vm0, %v1068_v22, -inf  ;;  %v1979_v16 = vld [vmem:[%s2659_s0 + $0x8] sm:$0xff]  ;;  %v1980_v22 = vld [vmem:[%s2659_s0 + $0x10] sm:$0xff] }
 0x1e4   :  { %v1175_v25 = vmax.f32 %v1173_v17, %v1174_v21  ;;  %v966_v28 = vpop.f32.mrf.mxu1 }
 0x1e5   :  { %v1176_v29 = vsel %vm155_vm0, %v1067_v23, -inf  ;;  %v967_v30 = vadd.f32 %v966_v28, %v2413_v39  ;;  %v1070_v32 = vmax.f32 %v972_v9, 0.0  ;;  %v1981_v9 = vld [vmem:[%s2659_s0 + $0x18] sm:$0xff] }
 0x1e6   :  { %v1177_v31 = vmax.f32 %v1175_v25, %v1176_v29  ;;  %v1892_v26 = vpop.f32.mrf.mxu1  ;;  %v1982_v29 = vld [vmem:[%s2659_s0 + $0x20] sm:$0xff] }
 0x1e7   :  { %v1069_v40 = vmax.f32 %v967_v30, 0.0  ;;  %v982_v42 = vadd.f32 %v1892_v26, %v2413_v39  ;;  %v1182_v60 = vsel %vm155_vm0, %v1070_v32, -inf  ;;  %v1983_v26 = vld [vmem:[%s2659_s0 + $0x28] sm:$0xff] }
 0x1e8   :  { %v1179_v44 = vmax.f32 %v1177_v31, %v1178_v33  ;;  %v976_v45 = vpop.f32.mrf.mxu1 }
 0x1e9   :  { %v1180_v46 = vsel %vm155_vm0, %v1069_v40, -inf  ;;  %v977_v52 = vadd.f32 %v976_v45, %v2413_v39  ;;  %v1072_v62 = vmax.f32 %v982_v42, 0.0  ;;  %v1984_v40 = vld [vmem:[%s2659_s0 + $0x30] sm:$0xff]  ;;  %v1985_v45 = vld [vmem:[%s2659_s0 + $0x38] sm:$0xff] }
 0x1ea   :  { %v1181_v57 = vmax.f32 %v1179_v44, %v1180_v46  ;;  %v1895_v58 = vpop.f32.mrf.mxu1 }
 0x1eb   :  { %v1071_v63 = vmax.f32 %v977_v52, 0.0  ;;  %v992_v0 = vadd.f32 %v1895_v58, %v2413_v39  ;;  %v1185_v6 = vsel %vm155_vm0, %v1072_v62, -inf  ;;  %v1391_v52 = vld [vmem:[%s2665_s6 + $0x18] sm:$0xff]  ;;  %v1389_v58 = vld [vmem:[%s2665_s6 + $0x8] sm:$0xff]  ;;  %v1249_v62 = vsub.s32 2, %v2133_v41 }
 0x1ec   :  { %v986_v19 = vpop.f32.mrf.mxu1  ;;  %v1183_v3 = vmax.f32 %v1181_v57, %v1182_v60  ;;  %1930 = vmatprep.subr.mxu0 %v1391_v52  ;;  %v1390_v57 = vld [vmem:[%s2665_s6 + $0x10] sm:$0xff]  ;;  %v1388_v60 = vld [vmem:[%s2665_s6] sm:$0xff]  ;;  %s1990_s6 = smov 64  }
 0x1ed   :  { %v1184_v59 = vsel %vm155_vm0, %v1071_v63, -inf  ;;  %v987_v4 = vadd.f32 %v986_v19, %v2413_v39  ;;  %v1074_v8 = vmax.f32 %v992_v0, 0.0  ;;  %v1986_v63 = vld [vmem:[%s2663_s7] sm:$0xf]  ;;  %s1991_s7 = smov 96  }
 0x1ee   :  { %v1898_v5 = vpop.f32.mrf.mxu1  ;;  %1219 = vrot.lane.b32.xlu0 %v1183_v3, %s1989_s28  ;;  %v1186_v12 = vmax.f32 %v1184_v59, %v1185_v6  ;;  %v1250_v0 = vrot.slane %v1986_v63, %v1249_v62 }
 0x1ef   :  { %v1073_v10 = vmax.f32 %v987_v4, 0.0  ;;  %v1002_v11 = vadd.f32 %v1898_v5, %v2413_v39  ;;  %v1189_v38 = vsel %vm155_vm0, %v1074_v8, -inf }
 0x1f0   :  { %v996_v14 = vpop.f32.mrf.mxu1 }
 0x1f1   :  { %v1187_v34 = vsel %vm155_vm0, %v1073_v10, -inf  ;;  %v997_v15 = vadd.f32 %v996_v14, %v2413_v39  ;;  %v1076_v37 = vmax.f32 %v1002_v11, 0.0 }
 0x1f2   :  { %v1188_v24 = vmax.f32 %v1186_v12, %v1187_v34  ;;  %v1901_v13 = vpop.f32.mrf.mxu1 }
 0x1f3   :  { %v1075_v7 = vmax.f32 %v997_v15, 0.0  ;;  %v1012_v27 = vadd.f32 %v1901_v13, %v2413_v39  ;;  %v1193_v56 = vsel %vm155_vm0, %v1076_v37, -inf }
 0x1f4   :  { %v1190_v20 = vmax.f32 %v1188_v24, %v1189_v38  ;;  %v1006_v36 = vpop.f32.mrf.mxu1 }
 0x1f5   :  { %v1191_v48 = vsel %vm155_vm0, %v1075_v7, -inf  ;;  %v1007_v50 = vadd.f32 %v1006_v36, %v2413_v39  ;;  %v1078_v2 = vmax.f32 %v1012_v27, 0.0 }
 0x1f6   :  { %v1192_v49 = vmax.f32 %v1190_v20, %v1191_v48 }
 0x1f7   :  { %v1077_v51 = vmax.f32 %v1007_v50, 0.0  ;;  %v1197_v54 = vsel %vm155_vm0, %v1078_v2, -inf }
 0x1f8   :  { %v1194_v53 = vmax.f32 %v1192_v49, %v1193_v56  ;;  %v1394_v56 = vsub.s32 3, %v2133_v41 }
 0x1f9   :  { %v1195_v35 = vsel %vm155_vm0, %v1077_v51, -inf }
 0x1fa   :  { %v1196_v47 = vmax.f32 %v1194_v53, %v1195_v35  ;;  %v1395_v2 = vrot.slane %v1986_v63, %v1394_v56 }
 0x1fc   :  { %v1198_v61 = vmax.f32 %v1196_v47, %v1197_v54 }
 0x1fe   :  { %1221 = vrot.lane.b32.xlu1 %v1198_v61, %s1989_s28 }
 0x220   :  { %v1208_v43 = vpop.permute.xlu0 %1207 }
 0x221   :  { %v1231_v39 = vsel %vm155_vm0, %v1978_v55, %v1208_v43 }
 0x222   :  { %1918 = vmatprep.mubr.msk.f32.mxu0 %vm437_vm1, %v1231_v39 }
 0x230   :  { %v1210_v1 = vpop.permute.xlu1 %1209 }
 0x231   :  { %v1232_v17 = vsel %vm155_vm0, %v1979_v16, %v1210_v1 }
 0x232   :  { %1919 = vmatmul.mubr.msk.f32.vlgmr.msra.gmra.mxu0 %vm437_vm1, %v1232_v17 }
 0x233   :  { %1931 = vmatpush3.msra.mxu0 %v1391_v52 }
 0x234   :  { %v1214_v18 = vpop.permute.xlu1 %1213  ;;  %1932 = vmatprep.subr.mxu0 %v1390_v57 }
 0x235   :  { %v1234_v25 = vsel %vm155_vm0, %v1981_v9, %v1214_v18  ;;  %1933 = vmatpush3.msra.mxu0 %v1390_v57 }
 0x236   :  { %1934 = vmatprep.subr.mxu0 %v1389_v58 }
 0x237   :  { %1935 = vmatpush3.msra.mxu0 %v1389_v58 }
 0x238   :  { %1936 = vmatprep.subr.mxu0 %v1388_v60 }
 0x239   :  { %1937 = vmatpush3.msra.mxu0 %v1388_v60 }
 0x240   :  { %v1212_v21 = vpop.permute.xlu0 %1211 }
 0x241   :  { %v1233_v23 = vsel %vm155_vm0, %v1980_v22, %v1212_v21 }
 0x242   :  { %1921 = vmatprep.mubr.msk.f32.mxu0 %vm437_vm1, %v1233_v23 }
 0x243   :  { %1922 = vmatmul.mubr.msk.f32.gmra.mxu0 %vm437_vm1, %v1234_v25 }
 0x244   :  { %v1216_v28 = vpop.permute.xlu0 %1215 }
 0x245   :  { %v1235_v30 = vsel %vm155_vm0, %v1982_v29, %v1216_v28 }
 0x246   :  { %1924 = vmatprep.mubr.msk.f32.mxu0 %vm437_vm1, %v1235_v30 }
 0x250   :  { %v1218_v31 = vpop.permute.xlu1 %1217 }
 0x251   :  { %v1236_v33 = vsel %vm155_vm0, %v1983_v26, %v1218_v31 }
 0x252   :  { %1925 = vmatmul.mubr.msk.f32.gmra.mxu0 %vm437_vm1, %v1236_v33 }
 0x260   :  { %v1220_v32 = vpop.permute.xlu0 %1219 }
 0x261   :  { %v1237_v42 = vsel %vm155_vm0, %v1984_v40, %v1220_v32 }
 0x262   :  { %1927 = vmatprep.mubr.msk.f32.mxu0 %vm437_vm1, %v1237_v42 }
 0x270   :  { %v1222_v44 = vpop.permute.xlu1 %1221 }
 0x271   :  { %v1238_v46 = vsel %vm155_vm0, %v1985_v45, %v1222_v44 }
 0x272   :  { %1928 = vmatmul.mubr.msk.f32.gmra.mxu0 %vm437_vm1, %v1238_v46 }
 0x2f2   :  { %v1920_v19 = vpop.f32.mrf.mxu0 }
 0x2f3   :  { %v1347_v3 = vadd.f32 %v1920_v19, %v1250_v0 }
 0x2f4   :  { %v1341_v59 = vpop.f32.mrf.mxu0 }
 0x2f5   :  { %v1342_v4 = vadd.f32 %v1341_v59, %v1250_v0  ;;  %v1381_v6 = vmax.f32 %v1347_v3, 0.0 }
 0x2f7   :  { %v1380_v5 = vmax.f32 %v1342_v4, 0.0 }
 0x2f9   :  { %1938 = vmatprep.mubr.msk.f32.mxu0 %vm155_vm0, %v1380_v5 }
 0x2fa   :  { %1939 = vmatmul.mubr.msk.f32.vlgmr.msra.gmra.mxu0 %vm155_vm0, %v1381_v6 }
 0x303   :  { %v1923_v8 = vpop.f32.mrf.mxu0 }
 0x304   :  { %v1357_v10 = vadd.f32 %v1923_v8, %v1250_v0 }
 0x305   :  { %v1351_v11 = vpop.f32.mrf.mxu0 }
 0x306   :  { %v1352_v12 = vadd.f32 %v1351_v11, %v1250_v0  ;;  %v1383_v34 = vmax.f32 %v1357_v10, 0.0 }
 0x308   :  { %v1382_v14 = vmax.f32 %v1352_v12, 0.0 }
 0x30a   :  { %1941 = vmatprep.mubr.msk.f32.mxu0 %vm155_vm0, %v1382_v14 }
 0x30b   :  { %1942 = vmatmul.mubr.msk.f32.gmra.mxu0 %vm155_vm0, %v1383_v34 }
 0x312   :  { %v1926_v15 = vpop.f32.mrf.mxu0 }
 0x313   :  { %v1367_v24 = vadd.f32 %v1926_v15, %v1250_v0 }
 0x314   :  { %v1361_v13 = vpop.f32.mrf.mxu0 }
 0x315   :  { %v1362_v38 = vadd.f32 %v1361_v13, %v1250_v0  ;;  %v1385_v7 = vmax.f32 %v1367_v24, 0.0 }
 0x317   :  { %v1384_v37 = vmax.f32 %v1362_v38, 0.0 }
 0x319   :  { %1944 = vmatprep.mubr.msk.f32.mxu0 %vm155_vm0, %v1384_v37 }
 0x31a   :  { %1945 = vmatmul.mubr.msk.f32.gmra.mxu0 %vm155_vm0, %v1385_v7 }
 0x332   :  { %v1929_v27 = vpop.f32.mrf.mxu0 }
 0x333   :  { %v1377_v20 = vadd.f32 %v1929_v27, %v1250_v0 }
 0x334   :  { %v1371_v36 = vpop.f32.mrf.mxu0 }
 0x335   :  { %v1372_v48 = vadd.f32 %v1371_v36, %v1250_v0  ;;  %v1387_v49 = vmax.f32 %v1377_v20, 0.0 }
 0x337   :  { %v1386_v50 = vmax.f32 %v1372_v48, 0.0 }
 0x339   :  { %1947 = vmatprep.mubr.msk.f32.mxu0 %vm155_vm0, %v1386_v50 }
 0x33a   :  { %1948 = vmatmul.mubr.msk.f32.gmra.mxu0 %vm155_vm0, %v1387_v49 }
 0x3ba   :  { %v1940_v51 = vpop.f32.mrf.mxu0 }
 0x3bb   :  { %v1492_v53 = vadd.f32 %v1940_v51, %v1395_v2 }
 0x3bc   :  { %v1486_v47 = vpop.f32.mrf.mxu0 }
 0x3bd   :  { %v1526_v35 = vmax.f32 %v1492_v53, 0.0  ;;  %v1487_v30 = vadd.f32 %v1486_v47, %v1395_v2 }
 0x3bf   :  { %1534 = vrot.lane.b32.xlu0 %v1526_v35, %s1989_s28  ;;  %v1525_v26 = vmax.f32 %v1487_v30, 0.0 }
 0x3cb   :  { %v1943_v54 = vpop.f32.mrf.mxu0 }
 0x3cc   :  { %v1502_v55 = vadd.f32 %v1943_v54, %v1395_v2 }
 0x3cd   :  { %v1496_v61 = vpop.f32.mrf.mxu0 }
 0x3ce   :  { %v1497_v43 = vadd.f32 %v1496_v61, %v1395_v2  ;;  %v1528_v1 = vmax.f32 %v1502_v55, 0.0 }
 0x3d0   :  { %v1527_v39 = vmax.f32 %v1497_v43, 0.0 }
 0x3d2   :  { %1538 = vrot.lane.b32.xlu0 %v1527_v39, %s1990_s6 }
 0x3d6   :  { %1542 = vrot.lane.b32.xlu0 %v1528_v1, %s1991_s7 }
 0x3da   :  { %v1946_v16 = vpop.f32.mrf.mxu0 }
 0x3db   :  { %v1512_v17 = vadd.f32 %v1946_v16, %v1395_v2 }
 0x3dc   :  { %v1506_v18 = vpop.f32.mrf.mxu0 }
 0x3dd   :  { %v1530_v41 = vmax.f32 %v1512_v17, 0.0  ;;  %v1507_v45 = vadd.f32 %v1506_v18, %v1395_v2 }
 0x3df   :  { %1546 = vrot.lane.b32.xlu1 %v1530_v41, %s1989_s28  ;;  %v1529_v52 = vmax.f32 %v1507_v45, 0.0 }
 0x3fa   :  { %v1949_v21 = vpop.f32.mrf.mxu0 }
 0x3fb   :  { %v1522_v9 = vadd.f32 %v1949_v21, %v1395_v2 }
 0x3fc   :  { %v1516_v22 = vpop.f32.mrf.mxu0 }
 0x3fd   :  { %v1517_v23 = vadd.f32 %v1516_v22, %v1395_v2  ;;  %v1532_v28 = vmax.f32 %v1522_v9, 0.0 }
 0x3ff   :  { %v1531_v25 = vmax.f32 %v1517_v23, 0.0 }
 0x401   :  { %1550 = vrot.lane.b32.xlu1 %v1531_v25, %s1990_s6 }
 0x405   :  { %1554 = vrot.lane.b32.xlu1 %v1532_v28, %s1991_s7 }
 0x431   :  { %v1535_v29 = vpop.permute.xlu0 %1534 }
 0x432   :  { %v1557_v33 = vsel %vm155_vm0, %v1525_v26, %v1535_v29 }
 0x444   :  { %v1539_v31 = vpop.permute.xlu0 %1538 }
 0x445   :  { %v1558_v32 = vsel %vm437_vm1, %v1557_v33, %v1539_v31 }
 0x448   :  { %v1543_v40 = vpop.permute.xlu0 %1542 }
 0x449   :  { %v1560_v42 = vsel %vm1559_vm2, %v1558_v32, %v1543_v40 }
 0x44a   :  { %1564 = vst [vmem:[%s2666_s8] sm:$0xff] %v1560_v42 }
 0x451   :  { %v1547_v44 = vpop.permute.xlu1 %1546 }
 0x452   :  { %v1561_v57 = vsel %vm155_vm0, %v1529_v52, %v1547_v44 }
 0x473   :  { %v1551_v46 = vpop.permute.xlu1 %1550 }
 0x474   :  { %v1562_v58 = vsel %vm437_vm1, %v1561_v57, %v1551_v46 }
 0x477   :  { %v1555_v60 = vpop.permute.xlu1 %1554 }
 0x478   :  { %v1563_v62 = vsel %vm1559_vm2, %v1562_v58, %v1555_v60 }
 0x479   :  { %1565 = vst [vmem:[%s2666_s8 + $0x8] sm:$0xff] %v1563_v62 }

</bundles_post_ra>
